<compile_context>
chip_gen: v7x
topology: tpu7x:2x2x1
jax: 0.10.0
libtpu: 0.0.40
codegen_flags: <defaults>
</compile_context>

<pallas_src>
import math
import functools

import jax
import jax.numpy as jnp
from jax import lax
from jax.experimental import pallas as pl
from jax.experimental.pallas import tpu as pltpu


def _decoder_block_kernel(H, tq,
                          x_ref, enc_ref, tgt_mask_ref, src_mask_ref,
                          s_w_ref, s_b_ref, c_w_ref, c_b_ref,
                          w1_ref, b1_ref, w2_ref, b2_ref,
                          lng_ref, lnb_ref,
                          out_ref,
                          sk_ref, sv_ref, ck_ref, cv_ref):
    S = x_ref.shape[1]
    D = x_ref.shape[2]
    dk = D // H
    inv_sqrt_dk = 1.0 / math.sqrt(dk)

    def layer_norm(v, idx):
        # Custom torch LayerNormalization: scalar gamma/beta (SMEM), unbiased std
        # (ddof=1), eps added to std (not variance).  Exact divide (EUP has slack).
        gamma = lng_ref[idx]
        beta = lnb_ref[idx]
        mean = jnp.mean(v, axis=-1, keepdims=True)
        var = jnp.sum((v - mean) ** 2, axis=-1, keepdims=True) * (1.0 / (D - 1))
        std = jnp.sqrt(var)
        return gamma * (v - mean) / (std + 1e-6) + beta

    def split_heads(t):
        # (rows, D) -> (H, rows, dk) via static lane slices + leading-axis stack
        # (avoids lane-splitting reshapes).
        return jnp.stack([t[:, h * dk:(h + 1) * dk] for h in range(H)], axis=0)

    # ---------- once per batch: cache self/cross K and V in VMEM scratch ----------
    @pl.when(pl.program_id(1) == 0)
    def _():
        def project_kv(src, w_ref, b_ref, k_dst, v_dst):
            src_bf = src.astype(jnp.bfloat16)
            k = jnp.dot(src_bf, w_ref[1],
                        preferred_element_type=jnp.float32) + b_ref[1]   # (S, D)
            v = jnp.dot(src_bf, w_ref[2],
                        preferred_element_type=jnp.float32) + b_ref[2]   # (S, D)
            k_dst[...] = split_heads(k).astype(jnp.bfloat16)             # (H, S, dk)
            v_dst[...] = split_heads(v).astype(jnp.bfloat16)

        # self-attn K/V come from LayerNorm(x); cross-attn K/V from raw encoder out.
        project_kv(layer_norm(x_ref[0], 0), s_w_ref, s_b_ref, sk_ref, sv_ref)
        project_kv(enc_ref[0], c_w_ref, c_b_ref, ck_ref, cv_ref)

    # ---------- per query tile ----------
    q_idx = pl.program_id(1)
    row0 = pl.multiple_of(q_idx * tq, tq)
    x_q = x_ref[0, pl.ds(row0, tq), :]        # (tq, D) f32, sliced from resident block
    tgt_mask = tgt_mask_ref[0]                # (tq, S) bf16, 1 = keep / 0 = masked
    src_mask = src_mask_ref[0]

    def mha(q_rows_ln, k_ref, v_ref, w_ref, b_ref, mask):
        # Fused lane-dense Q projection: (tq, D) @ (D, D).
        q_flat = jnp.dot(q_rows_ln.astype(jnp.bfloat16), w_ref[0],
                         preferred_element_type=jnp.float32) + b_ref[0]
        qh = split_heads(q_flat).astype(jnp.bfloat16)                 # (H, tq, dk)

        dn_score = (((2,), (2,)), ((0,), (0,)))                       # 'hqd,hkd->hqk'
        s = lax.dot_general(qh, k_ref[...], dn_score,
                            preferred_element_type=jnp.float32) * inv_sqrt_dk
        # masked_fill semantics; fully-masked rows give uniform 1/S attention,
        # exactly matching torch's masked_fill + softmax.
        s = jnp.where(mask[None, :, :] == 0, -1e9, s)
        s = s - jnp.max(s, axis=-1, keepdims=True)
        p = jnp.exp(s)
        p = p * pl.reciprocal(jnp.sum(p, axis=-1, keepdims=True), approx=True)

        dn_ctx = (((2,), (1,)), ((0,), (0,)))                         # 'hqk,hkd->hqd'
        ctx = lax.dot_general(p.astype(jnp.bfloat16), v_ref[...], dn_ctx,
                              preferred_element_type=jnp.float32)     # (H, tq, dk)
        # Merge heads along lanes -> single K = D dense output projection.
        ctx_flat = jnp.concatenate([ctx[h] for h in range(H)], axis=-1)  # (tq, D)
        return jnp.dot(ctx_flat.astype(jnp.bfloat16), w_ref[3],
                       preferred_element_type=jnp.float32) + b_ref[3]

    # TODO(synk): dropout layers are identity at inference and are omitted here.
    # TODO(synk): for very long S on v7x (64 MiB VMEM), tile the KV axis with an
    # online-softmax inner loop instead of materializing (H, tq, S) f32 scores.
    # TODO(synk): causal tgt_mask could be generated in-kernel from iota and src
    # padding passed as a (B, S) vector to cut mask HBM traffic further (v5e).

    # residual 1: pre-LN self-attention (Q from the query tile, K/V from cache).
    n1_q = layer_norm(x_q, 0)
    x1 = x_q + mha(n1_q, sk_ref, sv_ref, s_w_ref, s_b_ref, tgt_mask)

    # residual 2: pre-LN cross-attention (K/V cache built from raw encoder output).
    n2 = layer_norm(x1, 1)
    x2 = x1 + mha(n2, ck_ref, cv_ref, c_w_ref, c_b_ref, src_mask)

    # residual 3: feed-forward.
    n3 = layer_norm(x2, 2)
    h = jnp.dot(n3.astype(jnp.bfloat16), w1_ref[...],
                preferred_element_type=jnp.float32) + b1_ref[...]
    h = jnp.maximum(h, 0.0)
    ff = jnp.dot(h.astype(jnp.bfloat16), w2_ref[...],
                 preferred_element_type=jnp.float32) + b2_ref[...]

    out_ref[0] = (x2 + ff).astype(out_ref.dtype)


def _prepare_kernel_params(params):
    """Cast torch-style params into the kernel layout (bf16 weights, f32 biases)."""
    return dict(
        s_w=params["self_w"].astype(jnp.bfloat16),     # (4, D, D), (in, out)
        s_b=params["self_b"].astype(jnp.float32),      # (4, 1, D)
        c_w=params["cross_w"].astype(jnp.bfloat16),
        c_b=params["cross_b"].astype(jnp.float32),
        w1=params["w1"].astype(jnp.bfloat16), b1=params["b1"].astype(jnp.float32),
        w2=params["w2"].astype(jnp.bfloat16), b2=params["b2"].astype(jnp.float32),
        ln_gamma=params["ln_gamma"].reshape(-1).astype(jnp.float32),   # (3,)
        ln_beta=params["ln_beta"].reshape(-1).astype(jnp.float32),     # (3,)
    )


def decoder_block(x, enc, tgt_mask, src_mask, params, tq=None):
    B, S, D = x.shape
    H = params["h"]
    D_FF = params["w1"].shape[1]
    dk = D // H

    if tq is None:
        tq = S
        for cand in (256, 128, 64, 32, 16, 8):   # biggest divisible tile, caps at 256
            if S % cand == 0:
                tq = cand
                break
    assert S % tq == 0, "seq_len must be divisible by the query tile size"
    nq = S // tq

    kp = _prepare_kernel_params(params)

    # Masks hold only 0/1 -> bf16 is lossless and halves mask HBM traffic.
    tgt_mask = tgt_mask.astype(jnp.bfloat16)
    src_mask = src_mask.astype(jnp.bfloat16)

    def rep(shape):
        n = len(shape)
        return pl.BlockSpec(shape, lambda b, q, _n=n: (0,) * _n)

    smem_spec = pl.BlockSpec(memory_space=pltpu.MemorySpace.SMEM)

    in_specs = [
        pl.BlockSpec((1, S, D), lambda b, q: (b, 0, 0)),    # x (full: Q tiles sliced in-kernel, K/V source)
        pl.BlockSpec((1, S, D), lambda b, q: (b, 0, 0)),    # encoder_output (full)
        pl.BlockSpec((1, tq, S), lambda b, q: (b, q, 0)),   # tgt_mask rows
        pl.BlockSpec((1, tq, S), lambda b, q: (b, q, 0)),   # src_mask rows
        rep((4, D, D)), rep((4, 1, D)),                     # self-attn W / b
        rep((4, D, D)), rep((4, 1, D)),                     # cross-attn W / b
        rep((D, D_FF)), rep((1, D_FF)), rep((D_FF, D)), rep((1, D)),   # FFN
        smem_spec, smem_spec,                               # LayerNorm gamma / beta (scalars)
    ]

    scratch_shapes = [
        pltpu.VMEM((H, S, dk), jnp.bfloat16),   # self-attn K cache
        pltpu.VMEM((H, S, dk), jnp.bfloat16),   # self-attn V cache
        pltpu.VMEM((H, S, dk), jnp.bfloat16),   # cross-attn K cache
        pltpu.VMEM((H, S, dk), jnp.bfloat16),   # cross-attn V cache
    ]

    # Generation-aware VMEM budget: ~96 MiB on 128 MiB parts (v5e/v6e),
    # ~48 MiB on v7x's 64 MiB per-TC VMEM.
    try:
        vmem_cap = pltpu.get_tpu_info().vmem_capacity_bytes
    except Exception:
        vmem_cap = 128 * 1024 * 1024
    vmem_limit = int(min(96 * 1024 * 1024, int(vmem_cap * 0.75)))

    kernel = functools.partial(_decoder_block_kernel, H, tq)

    return pl.pallas_call(
        kernel,
        out_shape=jax.ShapeDtypeStruct((B, S, D), jnp.float32),
        grid=(B, nq),
        in_specs=in_specs,
        out_specs=pl.BlockSpec((1, tq, D), lambda b, q: (b, q, 0)),
        scratch_shapes=scratch_shapes,
        compiler_params=pltpu.CompilerParams(
            # q axis must be "arbitrary": the K/V scratch cache carries across it.
            dimension_semantics=("parallel", "arbitrary"),
            vmem_limit_bytes=vmem_limit,
        ),
    )(x, enc, tgt_mask, src_mask,
      kp["s_w"], kp["s_b"], kp["c_w"], kp["c_b"],
      kp["w1"], kp["b1"], kp["w2"], kp["b2"],
      kp["ln_gamma"], kp["ln_beta"])


def reference(x, enc, tgt_mask, src_mask, params):
    """Pure-JAX f32 reference mirroring the PyTorch module (inference mode)."""
    H = params["h"]
    B, S, D = x.shape
    dk = D // H

    def layer_norm(v, idx):
        g = params["ln_gamma"][idx].reshape(())
        b = params["ln_beta"][idx].reshape(())
        mean = v.mean(-1, keepdims=True)
        std = jnp.sqrt(((v - mean) ** 2).sum(-1, keepdims=True) / (D - 1))
        return g * (v - mean) / (std + 1e-6) + b

    def mha(q_in, kv_in, w, b, mask):
        Q = q_in @ w[0] + b[0]
        K = kv_in @ w[1] + b[1]
        V = kv_in @ w[2] + b[2]

        def split(t):
            return t.reshape(B, S, H, dk).transpose(0, 2, 1, 3)

        Qh, Kh, Vh = split(Q), split(K), split(V)
        s = (Qh @ Kh.transpose(0, 1, 3, 2)) / math.sqrt(dk)
        s = jnp.where(mask[:, None, :, :] == 0, -1e9, s)
        p = jax.nn.softmax(s, axis=-1)
        o = (p @ Vh).transpose(0, 2, 1, 3).reshape(B, S, D)
        return o @ w[3] + b[3]

    n1 = layer_norm(x, 0)
    x1 = x + mha(n1, n1, params["self_w"], params["self_b"], tgt_mask)
    n2 = layer_norm(x1, 1)
    x2 = x1 + mha(n2, enc, params["cross_w"], params["cross_b"], src_mask)
    n3 = layer_norm(x2, 2)
    ff = jnp.maximum(n3 @ params["w1"] + params["b1"], 0.0) @ params["w2"] + params["b2"]
    return x2 + ff


if __name__ == "__main__":
    B, S, D, H, D_FF = 2, 8, 32, 4, 64

    key = jax.random.PRNGKey(0)
    ks = jax.random.split(key, 10)
    scale = 0.1
    params = {
        "h": H,
        "self_w": scale * jax.random.normal(ks[0], (4, D, D), jnp.float32),
        "self_b": scale * jax.random.normal(ks[1], (4, 1, D), jnp.float32),
        "cross_w": scale * jax.random.normal(ks[2], (4, D, D), jnp.float32),
        "cross_b": scale * jax.random.normal(ks[3], (4, 1, D), jnp.float32),
        "w1": scale * jax.random.normal(ks[4], (D, D_FF), jnp.float32),
        "b1": scale * jax.random.normal(ks[5], (1, D_FF), jnp.float32),
        "w2": scale * jax.random.normal(ks[6], (D_FF, D), jnp.float32),
        "b2": scale * jax.random.normal(ks[7], (1, D), jnp.float32),
        # torch default init of LayerNormalization: gamma=1, beta=0 (scalar params)
        "ln_gamma": jnp.ones((3, 1, 1), jnp.float32),
        "ln_beta": jnp.zeros((3, 1, 1), jnp.float32),
    }

    x = jax.random.normal(ks[8], (B, S, D), jnp.float32)
    enc = jax.random.normal(ks[9], (B, S, D), jnp.float32)
    # causal target mask, padding-style source mask (last 2 keys masked for batch 1)
    tgt_mask = jnp.broadcast_to(jnp.tril(jnp.ones((S, S), jnp.float32)), (B, S, S))
    src_mask = jnp.ones((B, S, S), jnp.float32).at[1, :, S - 2:].set(0.0)

    out = decoder_block(x, enc, tgt_mask, src_mask, params)
    out = jax.block_until_ready(out)

    ref = reference(x, enc, tgt_mask, src_mask, params)
    max_err = float(jnp.max(jnp.abs(out - ref)))
    assert out.shape == (B, S, D), out.shape
    # MXU operands are bf16 (f32 accumulation); softmax uses the EUP approximate
    # reciprocal (LayerNorm now uses the exact one).
    assert jnp.allclose(out, ref, atol=5e-2, rtol=5e-2), f"max abs err = {max_err}"
    print("KERNEL_OK")
</pallas_src>

<mosaic_0001>
module attributes {stable_mosaic.version = 11 : i64} {
  func.func @_decoder_block_kernel(%arg0: i32, %arg1: i32, %arg2: memref<1x8x32xf32, #tpu.memory_space<vmem>>, %arg3: memref<1x8x32xf32, #tpu.memory_space<vmem>>, %arg4: memref<1x8x8xbf16, #tpu.memory_space<vmem>>, %arg5: memref<1x8x8xbf16, #tpu.memory_space<vmem>>, %arg6: memref<4x32x32xbf16, #tpu.memory_space<vmem>>, %arg7: memref<4x1x32xf32, #tpu.memory_space<vmem>>, %arg8: memref<4x32x32xbf16, #tpu.memory_space<vmem>>, %arg9: memref<4x1x32xf32, #tpu.memory_space<vmem>>, %arg10: memref<32x64xbf16, #tpu.memory_space<vmem>>, %arg11: memref<1x64xf32, #tpu.memory_space<vmem>>, %arg12: memref<64x32xbf16, #tpu.memory_space<vmem>>, %arg13: memref<1x32xf32, #tpu.memory_space<vmem>>, %arg14: memref<3xf32, #tpu.memory_space<smem>>, %arg15: memref<3xf32, #tpu.memory_space<smem>>, %arg16: memref<1x8x32xf32, #tpu.memory_space<vmem>>, %arg17: memref<4x8x8xbf16, #tpu.memory_space<vmem>>, %arg18: memref<4x8x8xbf16, #tpu.memory_space<vmem>>, %arg19: memref<4x8x8xbf16, #tpu.memory_space<vmem>>, %arg20: memref<4x8x8xbf16, #tpu.memory_space<vmem>>) attributes {dimension_semantics = [#tpu.dimension_semantics<parallel>, #tpu.dimension_semantics<arbitrary>], iteration_bounds = array<i64: 2, 1>, scalar_prefetch = 0 : i64, scratch_operands = 4 : i64, tpu.core_type = #tpu.core_type<tc>, window_params = [{transform_indices = @transform_0, window_bounds = array<i64: 1, 8, 32>}, {transform_indices = @transform_1, window_bounds = array<i64: 1, 8, 32>}, {transform_indices = @transform_2, window_bounds = array<i64: 1, 8, 8>}, {transform_indices = @transform_3, window_bounds = array<i64: 1, 8, 8>}, {pipeline_mode = #tpu.pipeline_mode<synchronous>, transform_indices = @transform_4, window_bounds = array<i64: 4, 32, 32>}, {pipeline_mode = #tpu.pipeline_mode<synchronous>, transform_indices = @transform_5, window_bounds = array<i64: 4, 1, 32>}, {pipeline_mode = #tpu.pipeline_mode<synchronous>, transform_indices = @transform_6, window_bounds = array<i64: 4, 32, 32>}, {pipeline_mode = #tpu.pipeline_mode<synchronous>, transform_indices = @transform_7, window_bounds = array<i64: 4, 1, 32>}, {pipeline_mode = #tpu.pipeline_mode<synchronous>, transform_indices = @transform_8, window_bounds = array<i64: 32, 64>}, {pipeline_mode = #tpu.pipeline_mode<synchronous>, transform_indices = @transform_9, window_bounds = array<i64: 1, 64>}, {pipeline_mode = #tpu.pipeline_mode<synchronous>, transform_indices = @transform_10, window_bounds = array<i64: 64, 32>}, {pipeline_mode = #tpu.pipeline_mode<synchronous>, transform_indices = @transform_11, window_bounds = array<i64: 1, 32>}, {transform_indices = @transform_12, window_bounds = array<i64: 3>}, {transform_indices = @transform_13, window_bounds = array<i64: 3>}, {transform_indices = @transform_14, window_bounds = array<i64: 1, 8, 32>}]} {
    %c0_i32 = arith.constant 0 : i32
    %0 = arith.cmpi eq, %arg1, %c0_i32 : i32
    %1 = arith.extui %0 : i1 to i32
    %c0_i32_0 = arith.constant 0 : i32
    %2 = arith.cmpi ne, %1, %c0_i32_0 : i32
    scf.if %2 {
      %c0_93 = arith.constant 0 : index
      %c0_94 = arith.constant 0 : index
      %c0_95 = arith.constant 0 : index
      %222 = vector.load %arg2[%c0_93, %c0_94, %c0_95] : memref<1x8x32xf32, #tpu.memory_space<vmem>>, vector<1x8x32xf32>
      %223 = vector.shape_cast %222 : vector<1x8x32xf32> to vector<8x32xf32>
      %c0_96 = arith.constant 0 : index
      %224 = memref.load %arg14[%c0_96] : memref<3xf32, #tpu.memory_space<smem>>
      %c0_97 = arith.constant 0 : index
      %225 = memref.load %arg15[%c0_97] : memref<3xf32, #tpu.memory_space<smem>>
      %cst_98 = arith.constant dense<0.000000e+00> : vector<8xf32>
      %226 = vector.multi_reduction <add>, %223, %cst_98 [1] : vector<8x32xf32> to vector<8xf32>
      %227 = vector.shape_cast %226 : vector<8xf32> to vector<8x1xf32>
      %cst_99 = arith.constant 3.200000e+01 : f32
      %228 = vector.broadcast %cst_99 : f32 to vector<8x1xf32>
      %229 = arith.divf %227, %228 : vector<8x1xf32>
      %230 = vector.broadcast %229 : vector<8x1xf32> to vector<8x32xf32>
      %231 = arith.subf %223, %230 : vector<8x32xf32>
      %232 = arith.mulf %231, %231 : vector<8x32xf32>
      %cst_100 = arith.constant dense<0.000000e+00> : vector<8xf32>
      %233 = vector.multi_reduction <add>, %232, %cst_100 [1] : vector<8x32xf32> to vector<8xf32>
      %234 = vector.shape_cast %233 : vector<8xf32> to vector<8x1xf32>
      %cst_101 = arith.constant 0.0322580636 : f32
      %235 = vector.broadcast %cst_101 : f32 to vector<8x1xf32>
      %236 = arith.mulf %234, %235 : vector<8x1xf32>
      %237 = math.sqrt %236 : vector<8x1xf32>
      %238 = vector.broadcast %229 : vector<8x1xf32> to vector<8x32xf32>
      %239 = arith.subf %223, %238 : vector<8x32xf32>
      %240 = vector.broadcast %224 : f32 to vector<8x32xf32>
      %241 = arith.mulf %240, %239 : vector<8x32xf32>
      %cst_102 = arith.constant 9.99999997E-7 : f32
      %242 = vector.broadcast %cst_102 : f32 to vector<8x1xf32>
      %243 = arith.addf %237, %242 : vector<8x1xf32>
      %244 = vector.broadcast %243 : vector<8x1xf32> to vector<8x32xf32>
      %245 = arith.divf %241, %244 : vector<8x32xf32>
      %246 = vector.broadcast %225 : f32 to vector<8x32xf32>
      %247 = arith.addf %245, %246 : vector<8x32xf32>
      %248 = arith.truncf %247 : vector<8x32xf32> to vector<8x32xbf16>
      %c1_103 = arith.constant 1 : index
      %c0_104 = arith.constant 0 : index
      %c0_105 = arith.constant 0 : index
      %249 = vector.load %arg6[%c1_103, %c0_104, %c0_105] : memref<4x32x32xbf16, #tpu.memory_space<vmem>>, vector<1x32x32xbf16>
      %250 = vector.shape_cast %249 : vector<1x32x32xbf16> to vector<32x32xbf16>
      %cst_106 = arith.constant dense<0.000000e+00> : vector<8x32xf32>
      %251 = tpu.matmul %248, %250, %cst_106 {dimension_numbers = #tpu.dot_dimension_numbers<[1], [0], [0], [1], [0, 0, 1, 1], [], []>} : vector<8x32xbf16>, vector<32x32xbf16>, vector<8x32xf32> -> vector<8x32xf32>
      %c1_107 = arith.constant 1 : index
      %c0_108 = arith.constant 0 : index
      %c0_109 = arith.constant 0 : index
      %252 = vector.load %arg7[%c1_107, %c0_108, %c0_109] : memref<4x1x32xf32, #tpu.memory_space<vmem>>, vector<1x1x32xf32>
      %253 = vector.shape_cast %252 : vector<1x1x32xf32> to vector<1x32xf32>
      %254 = vector.broadcast %253 : vector<1x32xf32> to vector<8x32xf32>
      %255 = arith.addf %251, %254 : vector<8x32xf32>
      %c2_110 = arith.constant 2 : index
      %c0_111 = arith.constant 0 : index
      %c0_112 = arith.constant 0 : index
      %256 = vector.load %arg6[%c2_110, %c0_111, %c0_112] : memref<4x32x32xbf16, #tpu.memory_space<vmem>>, vector<1x32x32xbf16>
      %257 = vector.shape_cast %256 : vector<1x32x32xbf16> to vector<32x32xbf16>
      %cst_113 = arith.constant dense<0.000000e+00> : vector<8x32xf32>
      %258 = tpu.matmul %248, %257, %cst_113 {dimension_numbers = #tpu.dot_dimension_numbers<[1], [0], [0], [1], [0, 0, 1, 1], [], []>} : vector<8x32xbf16>, vector<32x32xbf16>, vector<8x32xf32> -> vector<8x32xf32>
      %c2_114 = arith.constant 2 : index
      %c0_115 = arith.constant 0 : index
      %c0_116 = arith.constant 0 : index
      %259 = vector.load %arg7[%c2_114, %c0_115, %c0_116] : memref<4x1x32xf32, #tpu.memory_space<vmem>>, vector<1x1x32xf32>
      %260 = vector.shape_cast %259 : vector<1x1x32xf32> to vector<1x32xf32>
      %261 = vector.broadcast %260 : vector<1x32xf32> to vector<8x32xf32>
      %262 = arith.addf %258, %261 : vector<8x32xf32>
      %263 = vector.extract_strided_slice %255 {offsets = [0, 0], sizes = [8, 8], strides = [1, 1]} : vector<8x32xf32> to vector<8x8xf32>
      %264 = vector.extract_strided_slice %255 {offsets = [0, 8], sizes = [8, 8], strides = [1, 1]} : vector<8x32xf32> to vector<8x8xf32>
      %265 = vector.extract_strided_slice %255 {offsets = [0, 16], sizes = [8, 8], strides = [1, 1]} : vector<8x32xf32> to vector<8x8xf32>
      %266 = vector.extract_strided_slice %255 {offsets = [0, 24], sizes = [8, 8], strides = [1, 1]} : vector<8x32xf32> to vector<8x8xf32>
      %267 = vector.shape_cast %263 : vector<8x8xf32> to vector<1x8x8xf32>
      %268 = vector.shape_cast %264 : vector<8x8xf32> to vector<1x8x8xf32>
      %269 = vector.shape_cast %265 : vector<8x8xf32> to vector<1x8x8xf32>
      %270 = vector.shape_cast %266 : vector<8x8xf32> to vector<1x8x8xf32>
      %271 = tpu.concatenate %267, %268, %269, %270 in 0 : vector<1x8x8xf32>, vector<1x8x8xf32>, vector<1x8x8xf32>, vector<1x8x8xf32> -> vector<4x8x8xf32>
      %272 = arith.truncf %271 : vector<4x8x8xf32> to vector<4x8x8xbf16>
      %c0_117 = arith.constant 0 : index
      %c0_118 = arith.constant 0 : index
      %c0_119 = arith.constant 0 : index
      %273 = vector.load %arg17[%c0_117, %c0_118, %c0_119] : memref<4x8x8xbf16, #tpu.memory_space<vmem>>, vector<4x8x8xbf16>
      tpu.vector_store %arg17[%c0_117, %c0_118, %c0_119], %272 {strides = array<i32>} : memref<4x8x8xbf16, #tpu.memory_space<vmem>>, vector<4x8x8xbf16>,
      %274 = vector.extract_strided_slice %262 {offsets = [0, 0], sizes = [8, 8], strides = [1, 1]} : vector<8x32xf32> to vector<8x8xf32>
      %275 = vector.extract_strided_slice %262 {offsets = [0, 8], sizes = [8, 8], strides = [1, 1]} : vector<8x32xf32> to vector<8x8xf32>
      %276 = vector.extract_strided_slice %262 {offsets = [0, 16], sizes = [8, 8], strides = [1, 1]} : vector<8x32xf32> to vector<8x8xf32>
      %277 = vector.extract_strided_slice %262 {offsets = [0, 24], sizes = [8, 8], strides = [1, 1]} : vector<8x32xf32> to vector<8x8xf32>
      %278 = vector.shape_cast %274 : vector<8x8xf32> to vector<1x8x8xf32>
      %279 = vector.shape_cast %275 : vector<8x8xf32> to vector<1x8x8xf32>
      %280 = vector.shape_cast %276 : vector<8x8xf32> to vector<1x8x8xf32>
      %281 = vector.shape_cast %277 : vector<8x8xf32> to vector<1x8x8xf32>
      %282 = tpu.concatenate %278, %279, %280, %281 in 0 : vector<1x8x8xf32>, vector<1x8x8xf32>, vector<1x8x8xf32>, vector<1x8x8xf32> -> vector<4x8x8xf32>
      %283 = arith.truncf %282 : vector<4x8x8xf32> to vector<4x8x8xbf16>
      %c0_120 = arith.constant 0 : index
      %c0_121 = arith.constant 0 : index
      %c0_122 = arith.constant 0 : index
      %284 = vector.load %arg18[%c0_120, %c0_121, %c0_122] : memref<4x8x8xbf16, #tpu.memory_space<vmem>>, vector<4x8x8xbf16>
      tpu.vector_store %arg18[%c0_120, %c0_121, %c0_122], %283 {strides = array<i32>} : memref<4x8x8xbf16, #tpu.memory_space<vmem>>, vector<4x8x8xbf16>,
      %c0_123 = arith.constant 0 : index
      %c0_124 = arith.constant 0 : index
      %c0_125 = arith.constant 0 : index
      %285 = vector.load %arg3[%c0_123, %c0_124, %c0_125] : memref<1x8x32xf32, #tpu.memory_space<vmem>>, vector<1x8x32xf32>
      %286 = vector.shape_cast %285 : vector<1x8x32xf32> to vector<8x32xf32>
      %287 = arith.truncf %286 : vector<8x32xf32> to vector<8x32xbf16>
      %c1_126 = arith.constant 1 : index
      %c0_127 = arith.constant 0 : index
      %c0_128 = arith.constant 0 : index
      %288 = vector.load %arg8[%c1_126, %c0_127, %c0_128] : memref<4x32x32xbf16, #tpu.memory_space<vmem>>, vector<1x32x32xbf16>
      %289 = vector.shape_cast %288 : vector<1x32x32xbf16> to vector<32x32xbf16>
      %cst_129 = arith.constant dense<0.000000e+00> : vector<8x32xf32>
      %290 = tpu.matmul %287, %289, %cst_129 {dimension_numbers = #tpu.dot_dimension_numbers<[1], [0], [0], [1], [0, 0, 1, 1], [], []>} : vector<8x32xbf16>, vector<32x32xbf16>, vector<8x32xf32> -> vector<8x32xf32>
      %c1_130 = arith.constant 1 : index
      %c0_131 = arith.constant 0 : index
      %c0_132 = arith.constant 0 : index
      %291 = vector.load %arg9[%c1_130, %c0_131, %c0_132] : memref<4x1x32xf32, #tpu.memory_space<vmem>>, vector<1x1x32xf32>
      %292 = vector.shape_cast %291 : vector<1x1x32xf32> to vector<1x32xf32>
      %293 = vector.broadcast %292 : vector<1x32xf32> to vector<8x32xf32>
      %294 = arith.addf %290, %293 : vector<8x32xf32>
      %c2_133 = arith.constant 2 : index
      %c0_134 = arith.constant 0 : index
      %c0_135 = arith.constant 0 : index
      %295 = vector.load %arg8[%c2_133, %c0_134, %c0_135] : memref<4x32x32xbf16, #tpu.memory_space<vmem>>, vector<1x32x32xbf16>
      %296 = vector.shape_cast %295 : vector<1x32x32xbf16> to vector<32x32xbf16>
      %cst_136 = arith.constant dense<0.000000e+00> : vector<8x32xf32>
      %297 = tpu.matmul %287, %296, %cst_136 {dimension_numbers = #tpu.dot_dimension_numbers<[1], [0], [0], [1], [0, 0, 1, 1], [], []>} : vector<8x32xbf16>, vector<32x32xbf16>, vector<8x32xf32> -> vector<8x32xf32>
      %c2_137 = arith.constant 2 : index
      %c0_138 = arith.constant 0 : index
      %c0_139 = arith.constant 0 : index
      %298 = vector.load %arg9[%c2_137, %c0_138, %c0_139] : memref<4x1x32xf32, #tpu.memory_space<vmem>>, vector<1x1x32xf32>
      %299 = vector.shape_cast %298 : vector<1x1x32xf32> to vector<1x32xf32>
      %300 = vector.broadcast %299 : vector<1x32xf32> to vector<8x32xf32>
      %301 = arith.addf %297, %300 : vector<8x32xf32>
      %302 = vector.extract_strided_slice %294 {offsets = [0, 0], sizes = [8, 8], strides = [1, 1]} : vector<8x32xf32> to vector<8x8xf32>
      %303 = vector.extract_strided_slice %294 {offsets = [0, 8], sizes = [8, 8], strides = [1, 1]} : vector<8x32xf32> to vector<8x8xf32>
      %304 = vector.extract_strided_slice %294 {offsets = [0, 16], sizes = [8, 8], strides = [1, 1]} : vector<8x32xf32> to vector<8x8xf32>
      %305 = vector.extract_strided_slice %294 {offsets = [0, 24], sizes = [8, 8], strides = [1, 1]} : vector<8x32xf32> to vector<8x8xf32>
      %306 = vector.shape_cast %302 : vector<8x8xf32> to vector<1x8x8xf32>
      %307 = vector.shape_cast %303 : vector<8x8xf32> to vector<1x8x8xf32>
      %308 = vector.shape_cast %304 : vector<8x8xf32> to vector<1x8x8xf32>
      %309 = vector.shape_cast %305 : vector<8x8xf32> to vector<1x8x8xf32>
      %310 = tpu.concatenate %306, %307, %308, %309 in 0 : vector<1x8x8xf32>, vector<1x8x8xf32>, vector<1x8x8xf32>, vector<1x8x8xf32> -> vector<4x8x8xf32>
      %311 = arith.truncf %310 : vector<4x8x8xf32> to vector<4x8x8xbf16>
      %c0_140 = arith.constant 0 : index
      %c0_141 = arith.constant 0 : index
      %c0_142 = arith.constant 0 : index
      %312 = vector.load %arg19[%c0_140, %c0_141, %c0_142] : memref<4x8x8xbf16, #tpu.memory_space<vmem>>, vector<4x8x8xbf16>
      tpu.vector_store %arg19[%c0_140, %c0_141, %c0_142], %311 {strides = array<i32>} : memref<4x8x8xbf16, #tpu.memory_space<vmem>>, vector<4x8x8xbf16>,
      %313 = vector.extract_strided_slice %301 {offsets = [0, 0], sizes = [8, 8], strides = [1, 1]} : vector<8x32xf32> to vector<8x8xf32>
      %314 = vector.extract_strided_slice %301 {offsets = [0, 8], sizes = [8, 8], strides = [1, 1]} : vector<8x32xf32> to vector<8x8xf32>
      %315 = vector.extract_strided_slice %301 {offsets = [0, 16], sizes = [8, 8], strides = [1, 1]} : vector<8x32xf32> to vector<8x8xf32>
      %316 = vector.extract_strided_slice %301 {offsets = [0, 24], sizes = [8, 8], strides = [1, 1]} : vector<8x32xf32> to vector<8x8xf32>
      %317 = vector.shape_cast %313 : vector<8x8xf32> to vector<1x8x8xf32>
      %318 = vector.shape_cast %314 : vector<8x8xf32> to vector<1x8x8xf32>
      %319 = vector.shape_cast %315 : vector<8x8xf32> to vector<1x8x8xf32>
      %320 = vector.shape_cast %316 : vector<8x8xf32> to vector<1x8x8xf32>
      %321 = tpu.concatenate %317, %318, %319, %320 in 0 : vector<1x8x8xf32>, vector<1x8x8xf32>, vector<1x8x8xf32>, vector<1x8x8xf32> -> vector<4x8x8xf32>
      %322 = arith.truncf %321 : vector<4x8x8xf32> to vector<4x8x8xbf16>
      %c0_143 = arith.constant 0 : index
      %c0_144 = arith.constant 0 : index
      %c0_145 = arith.constant 0 : index
      %323 = vector.load %arg20[%c0_143, %c0_144, %c0_145] : memref<4x8x8xbf16, #tpu.memory_space<vmem>>, vector<4x8x8xbf16>
      tpu.vector_store %arg20[%c0_143, %c0_144, %c0_145], %322 {strides = array<i32>} : memref<4x8x8xbf16, #tpu.memory_space<vmem>>, vector<4x8x8xbf16>,
    } else {
    }
    %c8_i32 = arith.constant 8 : i32
    %3 = arith.muli %arg1, %c8_i32 : i32
    %4 = tpu.assume_multiple %3, 8 : i32
    %c0 = arith.constant 0 : index
    %5 = arith.index_cast %4 : i32 to index
    %c0_1 = arith.constant 0 : index
    %6 = vector.load %arg2[%c0, %5, %c0_1] : memref<1x8x32xf32, #tpu.memory_space<vmem>>, vector<1x8x32xf32>
    %7 = vector.shape_cast %6 : vector<1x8x32xf32> to vector<8x32xf32>
    %c0_2 = arith.constant 0 : index
    %c0_3 = arith.constant 0 : index
    %c0_4 = arith.constant 0 : index
    %8 = vector.load %arg4[%c0_2, %c0_3, %c0_4] : memref<1x8x8xbf16, #tpu.memory_space<vmem>>, vector<1x8x8xbf16>
    %9 = vector.shape_cast %8 : vector<1x8x8xbf16> to vector<8x8xbf16>
    %c0_5 = arith.constant 0 : index
    %c0_6 = arith.constant 0 : index
    %c0_7 = arith.constant 0 : index
    %10 = vector.load %arg5[%c0_5, %c0_6, %c0_7] : memref<1x8x8xbf16, #tpu.memory_space<vmem>>, vector<1x8x8xbf16>
    %11 = vector.shape_cast %10 : vector<1x8x8xbf16> to vector<8x8xbf16>
    %c0_8 = arith.constant 0 : index
    %12 = memref.load %arg14[%c0_8] : memref<3xf32, #tpu.memory_space<smem>>
    %c0_9 = arith.constant 0 : index
    %13 = memref.load %arg15[%c0_9] : memref<3xf32, #tpu.memory_space<smem>>
    %cst = arith.constant dense<0.000000e+00> : vector<8xf32>
    %14 = vector.multi_reduction <add>, %7, %cst [1] : vector<8x32xf32> to vector<8xf32>
    %15 = vector.shape_cast %14 : vector<8xf32> to vector<8x1xf32>
    %cst_10 = arith.constant 3.200000e+01 : f32
    %16 = vector.broadcast %cst_10 : f32 to vector<8x1xf32>
    %17 = arith.divf %15, %16 : vector<8x1xf32>
    %18 = vector.broadcast %17 : vector<8x1xf32> to vector<8x32xf32>
    %19 = arith.subf %7, %18 : vector<8x32xf32>
    %20 = arith.mulf %19, %19 : vector<8x32xf32>
    %cst_11 = arith.constant dense<0.000000e+00> : vector<8xf32>
    %21 = vector.multi_reduction <add>, %20, %cst_11 [1] : vector<8x32xf32> to vector<8xf32>
    %22 = vector.shape_cast %21 : vector<8xf32> to vector<8x1xf32>
    %cst_12 = arith.constant 0.0322580636 : f32
    %23 = vector.broadcast %cst_12 : f32 to vector<8x1xf32>
    %24 = arith.mulf %22, %23 : vector<8x1xf32>
    %25 = math.sqrt %24 : vector<8x1xf32>
    %26 = vector.broadcast %17 : vector<8x1xf32> to vector<8x32xf32>
    %27 = arith.subf %7, %26 : vector<8x32xf32>
    %28 = vector.broadcast %12 : f32 to vector<8x32xf32>
    %29 = arith.mulf %28, %27 : vector<8x32xf32>
    %cst_13 = arith.constant 9.99999997E-7 : f32
    %30 = vector.broadcast %cst_13 : f32 to vector<8x1xf32>
    %31 = arith.addf %25, %30 : vector<8x1xf32>
    %32 = vector.broadcast %31 : vector<8x1xf32> to vector<8x32xf32>
    %33 = arith.divf %29, %32 : vector<8x32xf32>
    %34 = vector.broadcast %13 : f32 to vector<8x32xf32>
    %35 = arith.addf %33, %34 : vector<8x32xf32>
    %36 = arith.truncf %35 : vector<8x32xf32> to vector<8x32xbf16>
    %c0_14 = arith.constant 0 : index
    %c0_15 = arith.constant 0 : index
    %c0_16 = arith.constant 0 : index
    %37 = vector.load %arg6[%c0_14, %c0_15, %c0_16] : memref<4x32x32xbf16, #tpu.memory_space<vmem>>, vector<1x32x32xbf16>
    %38 = vector.shape_cast %37 : vector<1x32x32xbf16> to vector<32x32xbf16>
    %cst_17 = arith.constant dense<0.000000e+00> : vector<8x32xf32>
    %39 = tpu.matmul %36, %38, %cst_17 {dimension_numbers = #tpu.dot_dimension_numbers<[1], [0], [0], [1], [0, 0, 1, 1], [], []>} : vector<8x32xbf16>, vector<32x32xbf16>, vector<8x32xf32> -> vector<8x32xf32>
    %c0_18 = arith.constant 0 : index
    %c0_19 = arith.constant 0 : index
    %c0_20 = arith.constant 0 : index
    %40 = vector.load %arg7[%c0_18, %c0_19, %c0_20] : memref<4x1x32xf32, #tpu.memory_space<vmem>>, vector<1x1x32xf32>
    %41 = vector.shape_cast %40 : vector<1x1x32xf32> to vector<1x32xf32>
    %42 = vector.broadcast %41 : vector<1x32xf32> to vector<8x32xf32>
    %43 = arith.addf %39, %42 : vector<8x32xf32>
    %44 = vector.extract_strided_slice %43 {offsets = [0, 0], sizes = [8, 8], strides = [1, 1]} : vector<8x32xf32> to vector<8x8xf32>
    %45 = vector.extract_strided_slice %43 {offsets = [0, 8], sizes = [8, 8], strides = [1, 1]} : vector<8x32xf32> to vector<8x8xf32>
    %46 = vector.extract_strided_slice %43 {offsets = [0, 16], sizes = [8, 8], strides = [1, 1]} : vector<8x32xf32> to vector<8x8xf32>
    %47 = vector.extract_strided_slice %43 {offsets = [0, 24], sizes = [8, 8], strides = [1, 1]} : vector<8x32xf32> to vector<8x8xf32>
    %48 = vector.shape_cast %44 : vector<8x8xf32> to vector<1x8x8xf32>
    %49 = vector.shape_cast %45 : vector<8x8xf32> to vector<1x8x8xf32>
    %50 = vector.shape_cast %46 : vector<8x8xf32> to vector<1x8x8xf32>
    %51 = vector.shape_cast %47 : vector<8x8xf32> to vector<1x8x8xf32>
    %52 = tpu.concatenate %48, %49, %50, %51 in 0 : vector<1x8x8xf32>, vector<1x8x8xf32>, vector<1x8x8xf32>, vector<1x8x8xf32> -> vector<4x8x8xf32>
    %53 = arith.truncf %52 : vector<4x8x8xf32> to vector<4x8x8xbf16>
    %c0_21 = arith.constant 0 : index
    %c0_22 = arith.constant 0 : index
    %c0_23 = arith.constant 0 : index
    %54 = vector.load %arg17[%c0_21, %c0_22, %c0_23] : memref<4x8x8xbf16, #tpu.memory_space<vmem>>, vector<4x8x8xbf16>
    %cst_24 = arith.constant dense<0.000000e+00> : vector<4x8x8xf32>
    %55 = tpu.matmul %53, %54, %cst_24 {dimension_numbers = #tpu.dot_dimension_numbers<[2], [2], [1], [1], [0, 0, 0, 1, 1, 1], [0], [0]>} : vector<4x8x8xbf16>, vector<4x8x8xbf16>, vector<4x8x8xf32> -> vector<4x8x8xf32>
    %cst_25 = arith.constant 0.353553385 : f32
    %56 = vector.broadcast %cst_25 : f32 to vector<4x8x8xf32>
    %57 = arith.mulf %55, %56 : vector<4x8x8xf32>
    %58 = vector.shape_cast %9 : vector<8x8xbf16> to vector<1x8x8xbf16>
    %cst_26 = arith.constant 0.000000e+00 : bf16
    %59 = vector.broadcast %cst_26 : bf16 to vector<1x8x8xbf16>
    %60 = arith.cmpf oeq, %58, %59 : vector<1x8x8xbf16>
    %cst_27 = arith.constant -1.000000e+09 : f32
    %61 = vector.shape_cast %60 : vector<1x8x8xi1> to vector<1x8x8xi1>
    %62 = vector.broadcast %61 : vector<1x8x8xi1> to vector<4x8x8xi1>
    %63 = vector.broadcast %cst_27 : f32 to vector<4x8x8xf32>
    %64 = arith.select %62, %63, %57 : vector<4x8x8xi1>, vector<4x8x8xf32>
    %cst_28 = arith.constant dense<0xFF800000> : vector<4x8xf32>
    %65 = vector.multi_reduction <maximumf>, %64, %cst_28 [2] : vector<4x8x8xf32> to vector<4x8xf32>
    %66 = vector.shape_cast %65 : vector<4x8xf32> to vector<4x8x1xf32>
    %67 = vector.broadcast %66 : vector<4x8x1xf32> to vector<4x8x8xf32>
    %68 = arith.subf %64, %67 : vector<4x8x8xf32>
    %69 = math.exp %68 : vector<4x8x8xf32>
    %cst_29 = arith.constant dense<0.000000e+00> : vector<4x8xf32>
    %70 = vector.multi_reduction <add>, %69, %cst_29 [2] : vector<4x8x8xf32> to vector<4x8xf32>
    %71 = vector.shape_cast %70 : vector<4x8xf32> to vector<4x8x1xf32>
    %72 = tpu.reciprocal %71 {approx = true} : vector<4x8x1xf32> -> vector<4x8x1xf32>
    %73 = vector.broadcast %72 : vector<4x8x1xf32> to vector<4x8x8xf32>
    %74 = arith.mulf %69, %73 : vector<4x8x8xf32>
    %75 = arith.truncf %74 : vector<4x8x8xf32> to vector<4x8x8xbf16>
    %c0_30 = arith.constant 0 : index
    %c0_31 = arith.constant 0 : index
    %c0_32 = arith.constant 0 : index
    %76 = vector.load %arg18[%c0_30, %c0_31, %c0_32] : memref<4x8x8xbf16, #tpu.memory_space<vmem>>, vector<4x8x8xbf16>
    %cst_33 = arith.constant dense<0.000000e+00> : vector<4x8x8xf32>
    %77 = tpu.matmul %75, %76, %cst_33 {dimension_numbers = #tpu.dot_dimension_numbers<[2], [1], [1], [2], [0, 0, 0, 1, 1, 2], [0], [0]>} : vector<4x8x8xbf16>, vector<4x8x8xbf16>, vector<4x8x8xf32> -> vector<4x8x8xf32>
    %78 = vector.extract_strided_slice %77 {offsets = [0, 0, 0], sizes = [1, 8, 8], strides = [1, 1, 1]} : vector<4x8x8xf32> to vector<1x8x8xf32>
    %79 = vector.shape_cast %78 : vector<1x8x8xf32> to vector<8x8xf32>
    %80 = vector.extract_strided_slice %77 {offsets = [1, 0, 0], sizes = [1, 8, 8], strides = [1, 1, 1]} : vector<4x8x8xf32> to vector<1x8x8xf32>
    %81 = vector.shape_cast %80 : vector<1x8x8xf32> to vector<8x8xf32>
    %82 = vector.extract_strided_slice %77 {offsets = [2, 0, 0], sizes = [1, 8, 8], strides = [1, 1, 1]} : vector<4x8x8xf32> to vector<1x8x8xf32>
    %83 = vector.shape_cast %82 : vector<1x8x8xf32> to vector<8x8xf32>
    %84 = vector.extract_strided_slice %77 {offsets = [3, 0, 0], sizes = [1, 8, 8], strides = [1, 1, 1]} : vector<4x8x8xf32> to vector<1x8x8xf32>
    %85 = vector.shape_cast %84 : vector<1x8x8xf32> to vector<8x8xf32>
    %86 = tpu.concatenate %79, %81, %83, %85 in 1 : vector<8x8xf32>, vector<8x8xf32>, vector<8x8xf32>, vector<8x8xf32> -> vector<8x32xf32>
    %87 = arith.truncf %86 : vector<8x32xf32> to vector<8x32xbf16>
    %c3 = arith.constant 3 : index
    %c0_34 = arith.constant 0 : index
    %c0_35 = arith.constant 0 : index
    %88 = vector.load %arg6[%c3, %c0_34, %c0_35] : memref<4x32x32xbf16, #tpu.memory_space<vmem>>, vector<1x32x32xbf16>
    %89 = vector.shape_cast %88 : vector<1x32x32xbf16> to vector<32x32xbf16>
    %cst_36 = arith.constant dense<0.000000e+00> : vector<8x32xf32>
    %90 = tpu.matmul %87, %89, %cst_36 {dimension_numbers = #tpu.dot_dimension_numbers<[1], [0], [0], [1], [0, 0, 1, 1], [], []>} : vector<8x32xbf16>, vector<32x32xbf16>, vector<8x32xf32> -> vector<8x32xf32>
    %c3_37 = arith.constant 3 : index
    %c0_38 = arith.constant 0 : index
    %c0_39 = arith.constant 0 : index
    %91 = vector.load %arg7[%c3_37, %c0_38, %c0_39] : memref<4x1x32xf32, #tpu.memory_space<vmem>>, vector<1x1x32xf32>
    %92 = vector.shape_cast %91 : vector<1x1x32xf32> to vector<1x32xf32>
    %93 = vector.broadcast %92 : vector<1x32xf32> to vector<8x32xf32>
    %94 = arith.addf %90, %93 : vector<8x32xf32>
    %95 = arith.addf %7, %94 : vector<8x32xf32>
    %c1 = arith.constant 1 : index
    %96 = memref.load %arg14[%c1] : memref<3xf32, #tpu.memory_space<smem>>
    %c1_40 = arith.constant 1 : index
    %97 = memref.load %arg15[%c1_40] : memref<3xf32, #tpu.memory_space<smem>>
    %cst_41 = arith.constant dense<0.000000e+00> : vector<8xf32>
    %98 = vector.multi_reduction <add>, %95, %cst_41 [1] : vector<8x32xf32> to vector<8xf32>
    %99 = vector.shape_cast %98 : vector<8xf32> to vector<8x1xf32>
    %cst_42 = arith.constant 3.200000e+01 : f32
    %100 = vector.broadcast %cst_42 : f32 to vector<8x1xf32>
    %101 = arith.divf %99, %100 : vector<8x1xf32>
    %102 = vector.broadcast %101 : vector<8x1xf32> to vector<8x32xf32>
    %103 = arith.subf %95, %102 : vector<8x32xf32>
    %104 = arith.mulf %103, %103 : vector<8x32xf32>
    %cst_43 = arith.constant dense<0.000000e+00> : vector<8xf32>
    %105 = vector.multi_reduction <add>, %104, %cst_43 [1] : vector<8x32xf32> to vector<8xf32>
    %106 = vector.shape_cast %105 : vector<8xf32> to vector<8x1xf32>
    %cst_44 = arith.constant 0.0322580636 : f32
    %107 = vector.broadcast %cst_44 : f32 to vector<8x1xf32>
    %108 = arith.mulf %106, %107 : vector<8x1xf32>
    %109 = math.sqrt %108 : vector<8x1xf32>
    %110 = vector.broadcast %101 : vector<8x1xf32> to vector<8x32xf32>
    %111 = arith.subf %95, %110 : vector<8x32xf32>
    %112 = vector.broadcast %96 : f32 to vector<8x32xf32>
    %113 = arith.mulf %112, %111 : vector<8x32xf32>
    %cst_45 = arith.constant 9.99999997E-7 : f32
    %114 = vector.broadcast %cst_45 : f32 to vector<8x1xf32>
    %115 = arith.addf %109, %114 : vector<8x1xf32>
    %116 = vector.broadcast %115 : vector<8x1xf32> to vector<8x32xf32>
    %117 = arith.divf %113, %116 : vector<8x32xf32>
    %118 = vector.broadcast %97 : f32 to vector<8x32xf32>
    %119 = arith.addf %117, %118 : vector<8x32xf32>
    %120 = arith.truncf %119 : vector<8x32xf32> to vector<8x32xbf16>
    %c0_46 = arith.constant 0 : index
    %c0_47 = arith.constant 0 : index
    %c0_48 = arith.constant 0 : index
    %121 = vector.load %arg8[%c0_46, %c0_47, %c0_48] : memref<4x32x32xbf16, #tpu.memory_space<vmem>>, vector<1x32x32xbf16>
    %122 = vector.shape_cast %121 : vector<1x32x32xbf16> to vector<32x32xbf16>
    %cst_49 = arith.constant dense<0.000000e+00> : vector<8x32xf32>
    %123 = tpu.matmul %120, %122, %cst_49 {dimension_numbers = #tpu.dot_dimension_numbers<[1], [0], [0], [1], [0, 0, 1, 1], [], []>} : vector<8x32xbf16>, vector<32x32xbf16>, vector<8x32xf32> -> vector<8x32xf32>
    %c0_50 = arith.constant 0 : index
    %c0_51 = arith.constant 0 : index
    %c0_52 = arith.constant 0 : index
    %124 = vector.load %arg9[%c0_50, %c0_51, %c0_52] : memref<4x1x32xf32, #tpu.memory_space<vmem>>, vector<1x1x32xf32>
    %125 = vector.shape_cast %124 : vector<1x1x32xf32> to vector<1x32xf32>
    %126 = vector.broadcast %125 : vector<1x32xf32> to vector<8x32xf32>
    %127 = arith.addf %123, %126 : vector<8x32xf32>
    %128 = vector.extract_strided_slice %127 {offsets = [0, 0], sizes = [8, 8], strides = [1, 1]} : vector<8x32xf32> to vector<8x8xf32>
    %129 = vector.extract_strided_slice %127 {offsets = [0, 8], sizes = [8, 8], strides = [1, 1]} : vector<8x32xf32> to vector<8x8xf32>
    %130 = vector.extract_strided_slice %127 {offsets = [0, 16], sizes = [8, 8], strides = [1, 1]} : vector<8x32xf32> to vector<8x8xf32>
    %131 = vector.extract_strided_slice %127 {offsets = [0, 24], sizes = [8, 8], strides = [1, 1]} : vector<8x32xf32> to vector<8x8xf32>
    %132 = vector.shape_cast %128 : vector<8x8xf32> to vector<1x8x8xf32>
    %133 = vector.shape_cast %129 : vector<8x8xf32> to vector<1x8x8xf32>
    %134 = vector.shape_cast %130 : vector<8x8xf32> to vector<1x8x8xf32>
    %135 = vector.shape_cast %131 : vector<8x8xf32> to vector<1x8x8xf32>
    %136 = tpu.concatenate %132, %133, %134, %135 in 0 : vector<1x8x8xf32>, vector<1x8x8xf32>, vector<1x8x8xf32>, vector<1x8x8xf32> -> vector<4x8x8xf32>
    %137 = arith.truncf %136 : vector<4x8x8xf32> to vector<4x8x8xbf16>
    %c0_53 = arith.constant 0 : index
    %c0_54 = arith.constant 0 : index
    %c0_55 = arith.constant 0 : index
    %138 = vector.load %arg19[%c0_53, %c0_54, %c0_55] : memref<4x8x8xbf16, #tpu.memory_space<vmem>>, vector<4x8x8xbf16>
    %cst_56 = arith.constant dense<0.000000e+00> : vector<4x8x8xf32>
    %139 = tpu.matmul %137, %138, %cst_56 {dimension_numbers = #tpu.dot_dimension_numbers<[2], [2], [1], [1], [0, 0, 0, 1, 1, 1], [0], [0]>} : vector<4x8x8xbf16>, vector<4x8x8xbf16>, vector<4x8x8xf32> -> vector<4x8x8xf32>
    %cst_57 = arith.constant 0.353553385 : f32
    %140 = vector.broadcast %cst_57 : f32 to vector<4x8x8xf32>
    %141 = arith.mulf %139, %140 : vector<4x8x8xf32>
    %142 = vector.shape_cast %11 : vector<8x8xbf16> to vector<1x8x8xbf16>
    %cst_58 = arith.constant 0.000000e+00 : bf16
    %143 = vector.broadcast %cst_58 : bf16 to vector<1x8x8xbf16>
    %144 = arith.cmpf oeq, %142, %143 : vector<1x8x8xbf16>
    %cst_59 = arith.constant -1.000000e+09 : f32
    %145 = vector.shape_cast %144 : vector<1x8x8xi1> to vector<1x8x8xi1>
    %146 = vector.broadcast %145 : vector<1x8x8xi1> to vector<4x8x8xi1>
    %147 = vector.broadcast %cst_59 : f32 to vector<4x8x8xf32>
    %148 = arith.select %146, %147, %141 : vector<4x8x8xi1>, vector<4x8x8xf32>
    %cst_60 = arith.constant dense<0xFF800000> : vector<4x8xf32>
    %149 = vector.multi_reduction <maximumf>, %148, %cst_60 [2] : vector<4x8x8xf32> to vector<4x8xf32>
    %150 = vector.shape_cast %149 : vector<4x8xf32> to vector<4x8x1xf32>
    %151 = vector.broadcast %150 : vector<4x8x1xf32> to vector<4x8x8xf32>
    %152 = arith.subf %148, %151 : vector<4x8x8xf32>
    %153 = math.exp %152 : vector<4x8x8xf32>
    %cst_61 = arith.constant dense<0.000000e+00> : vector<4x8xf32>
    %154 = vector.multi_reduction <add>, %153, %cst_61 [2] : vector<4x8x8xf32> to vector<4x8xf32>
    %155 = vector.shape_cast %154 : vector<4x8xf32> to vector<4x8x1xf32>
    %156 = tpu.reciprocal %155 {approx = true} : vector<4x8x1xf32> -> vector<4x8x1xf32>
    %157 = vector.broadcast %156 : vector<4x8x1xf32> to vector<4x8x8xf32>
    %158 = arith.mulf %153, %157 : vector<4x8x8xf32>
    %159 = arith.truncf %158 : vector<4x8x8xf32> to vector<4x8x8xbf16>
    %c0_62 = arith.constant 0 : index
    %c0_63 = arith.constant 0 : index
    %c0_64 = arith.constant 0 : index
    %160 = vector.load %arg20[%c0_62, %c0_63, %c0_64] : memref<4x8x8xbf16, #tpu.memory_space<vmem>>, vector<4x8x8xbf16>
    %cst_65 = arith.constant dense<0.000000e+00> : vector<4x8x8xf32>
    %161 = tpu.matmul %159, %160, %cst_65 {dimension_numbers = #tpu.dot_dimension_numbers<[2], [1], [1], [2], [0, 0, 0, 1, 1, 2], [0], [0]>} : vector<4x8x8xbf16>, vector<4x8x8xbf16>, vector<4x8x8xf32> -> vector<4x8x8xf32>
    %162 = vector.extract_strided_slice %161 {offsets = [0, 0, 0], sizes = [1, 8, 8], strides = [1, 1, 1]} : vector<4x8x8xf32> to vector<1x8x8xf32>
    %163 = vector.shape_cast %162 : vector<1x8x8xf32> to vector<8x8xf32>
    %164 = vector.extract_strided_slice %161 {offsets = [1, 0, 0], sizes = [1, 8, 8], strides = [1, 1, 1]} : vector<4x8x8xf32> to vector<1x8x8xf32>
    %165 = vector.shape_cast %164 : vector<1x8x8xf32> to vector<8x8xf32>
    %166 = vector.extract_strided_slice %161 {offsets = [2, 0, 0], sizes = [1, 8, 8], strides = [1, 1, 1]} : vector<4x8x8xf32> to vector<1x8x8xf32>
    %167 = vector.shape_cast %166 : vector<1x8x8xf32> to vector<8x8xf32>
    %168 = vector.extract_strided_slice %161 {offsets = [3, 0, 0], sizes = [1, 8, 8], strides = [1, 1, 1]} : vector<4x8x8xf32> to vector<1x8x8xf32>
    %169 = vector.shape_cast %168 : vector<1x8x8xf32> to vector<8x8xf32>
    %170 = tpu.concatenate %163, %165, %167, %169 in 1 : vector<8x8xf32>, vector<8x8xf32>, vector<8x8xf32>, vector<8x8xf32> -> vector<8x32xf32>
    %171 = arith.truncf %170 : vector<8x32xf32> to vector<8x32xbf16>
    %c3_66 = arith.constant 3 : index
    %c0_67 = arith.constant 0 : index
    %c0_68 = arith.constant 0 : index
    %172 = vector.load %arg8[%c3_66, %c0_67, %c0_68] : memref<4x32x32xbf16, #tpu.memory_space<vmem>>, vector<1x32x32xbf16>
    %173 = vector.shape_cast %172 : vector<1x32x32xbf16> to vector<32x32xbf16>
    %cst_69 = arith.constant dense<0.000000e+00> : vector<8x32xf32>
    %174 = tpu.matmul %171, %173, %cst_69 {dimension_numbers = #tpu.dot_dimension_numbers<[1], [0], [0], [1], [0, 0, 1, 1], [], []>} : vector<8x32xbf16>, vector<32x32xbf16>, vector<8x32xf32> -> vector<8x32xf32>
    %c3_70 = arith.constant 3 : index
    %c0_71 = arith.constant 0 : index
    %c0_72 = arith.constant 0 : index
    %175 = vector.load %arg9[%c3_70, %c0_71, %c0_72] : memref<4x1x32xf32, #tpu.memory_space<vmem>>, vector<1x1x32xf32>
    %176 = vector.shape_cast %175 : vector<1x1x32xf32> to vector<1x32xf32>
    %177 = vector.broadcast %176 : vector<1x32xf32> to vector<8x32xf32>
    %178 = arith.addf %174, %177 : vector<8x32xf32>
    %179 = arith.addf %95, %178 : vector<8x32xf32>
    %c2 = arith.constant 2 : index
    %180 = memref.load %arg14[%c2] : memref<3xf32, #tpu.memory_space<smem>>
    %c2_73 = arith.constant 2 : index
    %181 = memref.load %arg15[%c2_73] : memref<3xf32, #tpu.memory_space<smem>>
    %cst_74 = arith.constant dense<0.000000e+00> : vector<8xf32>
    %182 = vector.multi_reduction <add>, %179, %cst_74 [1] : vector<8x32xf32> to vector<8xf32>
    %183 = vector.shape_cast %182 : vector<8xf32> to vector<8x1xf32>
    %cst_75 = arith.constant 3.200000e+01 : f32
    %184 = vector.broadcast %cst_75 : f32 to vector<8x1xf32>
    %185 = arith.divf %183, %184 : vector<8x1xf32>
    %186 = vector.broadcast %185 : vector<8x1xf32> to vector<8x32xf32>
    %187 = arith.subf %179, %186 : vector<8x32xf32>
    %188 = arith.mulf %187, %187 : vector<8x32xf32>
    %cst_76 = arith.constant dense<0.000000e+00> : vector<8xf32>
    %189 = vector.multi_reduction <add>, %188, %cst_76 [1] : vector<8x32xf32> to vector<8xf32>
    %190 = vector.shape_cast %189 : vector<8xf32> to vector<8x1xf32>
    %cst_77 = arith.constant 0.0322580636 : f32
    %191 = vector.broadcast %cst_77 : f32 to vector<8x1xf32>
    %192 = arith.mulf %190, %191 : vector<8x1xf32>
    %193 = math.sqrt %192 : vector<8x1xf32>
    %194 = vector.broadcast %185 : vector<8x1xf32> to vector<8x32xf32>
    %195 = arith.subf %179, %194 : vector<8x32xf32>
    %196 = vector.broadcast %180 : f32 to vector<8x32xf32>
    %197 = arith.mulf %196, %195 : vector<8x32xf32>
    %cst_78 = arith.constant 9.99999997E-7 : f32
    %198 = vector.broadcast %cst_78 : f32 to vector<8x1xf32>
    %199 = arith.addf %193, %198 : vector<8x1xf32>
    %200 = vector.broadcast %199 : vector<8x1xf32> to vector<8x32xf32>
    %201 = arith.divf %197, %200 : vector<8x32xf32>
    %202 = vector.broadcast %181 : f32 to vector<8x32xf32>
    %203 = arith.addf %201, %202 : vector<8x32xf32>
    %204 = arith.truncf %203 : vector<8x32xf32> to vector<8x32xbf16>
    %c0_79 = arith.constant 0 : index
    %c0_80 = arith.constant 0 : index
    %205 = vector.load %arg10[%c0_79, %c0_80] : memref<32x64xbf16, #tpu.memory_space<vmem>>, vector<32x64xbf16>
    %cst_81 = arith.constant dense<0.000000e+00> : vector<8x64xf32>
    %206 = tpu.matmul %204, %205, %cst_81 {dimension_numbers = #tpu.dot_dimension_numbers<[1], [0], [0], [1], [0, 0, 1, 1], [], []>} : vector<8x32xbf16>, vector<32x64xbf16>, vector<8x64xf32> -> vector<8x64xf32>
    %c0_82 = arith.constant 0 : index
    %c0_83 = arith.constant 0 : index
    %207 = vector.load %arg11[%c0_82, %c0_83] : memref<1x64xf32, #tpu.memory_space<vmem>>, vector<1x64xf32>
    %208 = vector.broadcast %207 : vector<1x64xf32> to vector<8x64xf32>
    %209 = arith.addf %206, %208 : vector<8x64xf32>
    %cst_84 = arith.constant 0.000000e+00 : f32
    %210 = vector.broadcast %cst_84 : f32 to vector<8x64xf32>
    %211 = arith.maximumf %209, %210 : vector<8x64xf32>
    %212 = arith.truncf %211 : vector<8x64xf32> to vector<8x64xbf16>
    %c0_85 = arith.constant 0 : index
    %c0_86 = arith.constant 0 : index
    %213 = vector.load %arg12[%c0_85, %c0_86] : memref<64x32xbf16, #tpu.memory_space<vmem>>, vector<64x32xbf16>
    %cst_87 = arith.constant dense<0.000000e+00> : vector<8x32xf32>
    %214 = tpu.matmul %212, %213, %cst_87 {dimension_numbers = #tpu.dot_dimension_numbers<[1], [0], [0], [1], [0, 0, 1, 1], [], []>} : vector<8x64xbf16>, vector<64x32xbf16>, vector<8x32xf32> -> vector<8x32xf32>
    %c0_88 = arith.constant 0 : index
    %c0_89 = arith.constant 0 : index
    %215 = vector.load %arg13[%c0_88, %c0_89] : memref<1x32xf32, #tpu.memory_space<vmem>>, vector<1x32xf32>
    %216 = vector.broadcast %215 : vector<1x32xf32> to vector<8x32xf32>
    %217 = arith.addf %214, %216 : vector<8x32xf32>
    %218 = arith.addf %179, %217 : vector<8x32xf32>
    %c0_90 = arith.constant 0 : index
    %c0_91 = arith.constant 0 : index
    %c0_92 = arith.constant 0 : index
    %219 = vector.load %arg16[%c0_90, %c0_91, %c0_92] : memref<1x8x32xf32, #tpu.memory_space<vmem>>, vector<1x8x32xf32>
    %220 = vector.shape_cast %219 : vector<1x8x32xf32> to vector<8x32xf32>
    %221 = vector.shape_cast %218 : vector<8x32xf32> to vector<1x8x32xf32>
    tpu.vector_store %arg16[%c0_90, %c0_91, %c0_92], %221 {strides = array<i32>} : memref<1x8x32xf32, #tpu.memory_space<vmem>>, vector<1x8x32xf32>,
    return
  }
  func.func @transform_0(%arg0: i32, %arg1: i32) -> (i32, i32, i32) {
    %c0_i32 = arith.constant 0 : i32
    %c0_i32_0 = arith.constant 0 : i32
    %c0_i32_1 = arith.constant 0 : i32
    return %arg0, %c0_i32, %c0_i32_0 : i32, i32, i32
  }
  func.func @transform_1(%arg0: i32, %arg1: i32) -> (i32, i32, i32) {
    %c0_i32 = arith.constant 0 : i32
    %c0_i32_0 = arith.constant 0 : i32
    %c0_i32_1 = arith.constant 0 : i32
    return %arg0, %c0_i32, %c0_i32_0 : i32, i32, i32
  }
  func.func @transform_2(%arg0: i32, %arg1: i32) -> (i32, i32, i32) {
    %c0_i32 = arith.constant 0 : i32
    %c0_i32_0 = arith.constant 0 : i32
    return %arg0, %arg1, %c0_i32 : i32, i32, i32
  }
  func.func @transform_3(%arg0: i32, %arg1: i32) -> (i32, i32, i32) {
    %c0_i32 = arith.constant 0 : i32
    %c0_i32_0 = arith.constant 0 : i32
    return %arg0, %arg1, %c0_i32 : i32, i32, i32
  }
  func.func @transform_4(%arg0: i32, %arg1: i32) -> (i32, i32, i32) {
    %c0_i32 = arith.constant 0 : i32
    %c0_i32_0 = arith.constant 0 : i32
    %c0_i32_1 = arith.constant 0 : i32
    %c0_i32_2 = arith.constant 0 : i32
    return %c0_i32, %c0_i32_0, %c0_i32_1 : i32, i32, i32
  }
  func.func @transform_5(%arg0: i32, %arg1: i32) -> (i32, i32, i32) {
    %c0_i32 = arith.constant 0 : i32
    %c0_i32_0 = arith.constant 0 : i32
    %c0_i32_1 = arith.constant 0 : i32
    %c0_i32_2 = arith.constant 0 : i32
    return %c0_i32, %c0_i32_0, %c0_i32_1 : i32, i32, i32
  }
  func.func @transform_6(%arg0: i32, %arg1: i32) -> (i32, i32, i32) {
    %c0_i32 = arith.constant 0 : i32
    %c0_i32_0 = arith.constant 0 : i32
    %c0_i32_1 = arith.constant 0 : i32
    %c0_i32_2 = arith.constant 0 : i32
    return %c0_i32, %c0_i32_0, %c0_i32_1 : i32, i32, i32
  }
  func.func @transform_7(%arg0: i32, %arg1: i32) -> (i32, i32, i32) {
    %c0_i32 = arith.constant 0 : i32
    %c0_i32_0 = arith.constant 0 : i32
    %c0_i32_1 = arith.constant 0 : i32
    %c0_i32_2 = arith.constant 0 : i32
    return %c0_i32, %c0_i32_0, %c0_i32_1 : i32, i32, i32
  }
  func.func @transform_8(%arg0: i32, %arg1: i32) -> (i32, i32) {
    %c0_i32 = arith.constant 0 : i32
    %c0_i32_0 = arith.constant 0 : i32
    %c0_i32_1 = arith.constant 0 : i32
    return %c0_i32, %c0_i32_0 : i32, i32
  }
  func.func @transform_9(%arg0: i32, %arg1: i32) -> (i32, i32) {
    %c0_i32 = arith.constant 0 : i32
    %c0_i32_0 = arith.constant 0 : i32
    %c0_i32_1 = arith.constant 0 : i32
    return %c0_i32, %c0_i32_0 : i32, i32
  }
  func.func @transform_10(%arg0: i32, %arg1: i32) -> (i32, i32) {
    %c0_i32 = arith.constant 0 : i32
    %c0_i32_0 = arith.constant 0 : i32
    %c0_i32_1 = arith.constant 0 : i32
    return %c0_i32, %c0_i32_0 : i32, i32
  }
  func.func @transform_11(%arg0: i32, %arg1: i32) -> (i32, i32) {
    %c0_i32 = arith.constant 0 : i32
    %c0_i32_0 = arith.constant 0 : i32
    %c0_i32_1 = arith.constant 0 : i32
    return %c0_i32, %c0_i32_0 : i32, i32
  }
  func.func @transform_12(%arg0: i32, %arg1: i32) -> i32 {
    %c0_i32 = arith.constant 0 : i32
    %c0_i32_0 = arith.constant 0 : i32
    return %c0_i32 : i32
  }
  func.func @transform_13(%arg0: i32, %arg1: i32) -> i32 {
    %c0_i32 = arith.constant 0 : i32
    %c0_i32_0 = arith.constant 0 : i32
    return %c0_i32 : i32
  }
  func.func @transform_14(%arg0: i32, %arg1: i32) -> (i32, i32, i32) {
    %c0_i32 = arith.constant 0 : i32
    %c0_i32_0 = arith.constant 0 : i32
    return %arg0, %arg1, %c0_i32 : i32, i32, i32
  }
}

</mosaic_0001>

<bundles_post_ra>
// kernel: tpu_custom_call.1
= control target key start
LH: loop header
LB: loop body
LE: loop exit
PB: predicated region body
PF: predicated region fallthrough
CT: control target
= control target key end

     0   :  { %s4886_s0 = inlined_call_operand.hbm [shape: f32[2,8,32], index: 0, kind: input, shape index: {}]   ;;  %s4887_s1 = inlined_call_operand.hbm [shape: f32[2,8,32], index: 1, kind: input, shape index: {}]   ;;  %s4888_s2 = inlined_call_operand.hbm [shape: bf16[2,8,8], index: 2, kind: input, shape index: {}]   ;;  %s4889_s3 = inlined_call_operand.hbm [shape: bf16[2,8,8], index: 3, kind: input, shape index: {}]   ;;  %s4890_s4 = inlined_call_operand.hbm [shape: bf16[4,32,32], index: 4, kind: input, shape index: {}]   ;;  %s4891_s5 = inlined_call_operand.hbm [shape: f32[4,1,32], index: 5, kind: input, shape index: {}]   ;;  %s4892_s6 = inlined_call_operand.hbm [shape: bf16[4,32,32], index: 6, kind: input, shape index: {}]   ;;  %s4893_s7 = inlined_call_operand.hbm [shape: f32[4,1,32], index: 7, kind: input, shape index: {}]   ;;  %s4894_s8 = inlined_call_operand.hbm [shape: bf16[32,64], index: 8, kind: input, shape index: {}]   ;;  %s4895_s9 = inlined_call_operand.hbm [shape: f32[1,64], index: 9, kind: input, shape index: {}]   ;;  %s4896_s10 = inlined_call_operand.hbm [shape: bf16[64,32], index: 10, kind: input, shape index: {}]   ;;  %s4897_s11 = inlined_call_operand.hbm [shape: f32[1,32], index: 11, kind: input, shape index: {}]   ;;  %s4898_s12 = inlined_call_operand.hbm [shape: f32[3], index: 12, kind: input, shape index: {}]   ;;  %s4899_s13 = inlined_call_operand.hbm [shape: f32[3], index: 13, kind: input, shape index: {}]   ;;  %s4900_s14 = inlined_call_operand.hbm [shape: f32[2,8,32], index: 14, kind: output, shape index: {}]  }
   0x1   :  { %4929 = sst [smem:[#allocation48_spill]] %s4886_s0 }
   0x2   :  { %4930 = sst [smem:[#allocation49_spill]] %s4887_s1 }
   0x3   :  { %4931 = sst [smem:[#allocation50_spill]] %s4888_s2 }
   0x4   :  { %4932 = sst [smem:[#allocation51_spill]] %s4889_s3 }
   0x5   :  { %4933 = sst [smem:[#allocation52_spill]] %s4890_s4 }
   0x6   :  { %4934 = sst [smem:[#allocation53_spill]] %s4891_s5 }
   0x7   :  { %4935 = sst [smem:[#allocation54_spill]] %s4892_s6 }
   0x8   :  { %4936 = sst [smem:[#allocation55_spill]] %s4893_s7 }
   0x9   :  { %4937 = sst [smem:[#allocation56_spill]] %s4895_s9 }
   0xa   :  { %4938 = sst [smem:[#allocation57_spill]] %s4899_s13 }
   0xb   :  { %4939 = sst [smem:[#allocation58_spill]] %s4900_s14 }
   0xc   :  { %19 = vsyncpa [#allocation7], 0 }
   0xd   :  { %21 = vsyncpa [#allocation7 + $0x1], 0 }
   0xe   :  { %22 = vsyncpa [#allocation11], 0 }
   0xf   :  { %24 = vsyncpa [#allocation11 + $0x1], 0 }
  0x10   :  { %25 = vsyncpa [#allocation14], 0 }
  0x11   :  { %27 = vsyncpa [#allocation14 + $0x1], 0 }
  0x12   :  { %28 = vsyncpa [#allocation17], 0 }
  0x13   :  { %29 = vsyncpa [#allocation20], 0 }
  0x14   :  { %30 = vsyncpa [#allocation23], 0 }
  0x15   :  { %31 = vsyncpa [#allocation26], 0 }
  0x16   :  { %32 = vsyncpa [#allocation9], 0 }
  0x17   :  { %33 = vsyncpa [#allocation29], 0 }
  0x18   :  { %34 = vsyncpa [#allocation8], 0 }
  0x19   :  { %36 = vsyncpa [#allocation8 + $0x1], 0  ;;  %s4039_s29 = smov 0   ;;  %s4041_s30 = smov 0  }
  0x1a   :  { %s4043_s15 = smov 0   ;;  %s4045_s16 = smov 0  }
  0x1b   :  { %s4047_s17 = smov 0   ;;  %s4049_s18 = smov 0  }
  0x1c LB: > { %4940 = sst [smem:[#allocation42_spill]] %s3922_s15  ;;  %s4070_s19 = sadd.s32 4294967295, %s3934_s18   ;;  %s3934_s18 = sphi %s4049_s18, %s42_s18   ;;  %s3930_s17 = sphi %s4047_s17, %s5010_s17   ;;  %s3926_s16 = sphi %s4045_s16, %s5009_s16   ;;  %s3922_s15 = sphi %s4043_s15, %s5005_s15   ;;  %s3918_s30 = sphi %s4041_s30, %s5008_s30   ;;  %s3914_s29 = sphi %s4039_s29, %s5007_s29  }
  0x1d   : > { %4941 = sst [smem:[#allocation43_spill]] %s3926_s16  ;;  %p2839_p0 = scmp.ge.s32.totalorder %s3934_s18, 1 }
  0x1e   : > { %p4911_p1 = scmp.eq.s32.totalorder %s4070_s19, 0  ;;  %p405_p2 = scmp.lt.s32.totalorder %s3934_s18, 3 }
  0x1f   : > { %s3936_s21 = smov [#allocation15]   ;;  %s3937_s24 = smov [#allocation16]  }
  0x20   : > { %p4075_p3 = pnand %p2839_p0, %p405_p2  ;;  %s417_s22 = sshll.u32 %s3936_s21, 4  ;;  %s4079_s22 = int_to_ptr.vmem [resolvable:$true] %s417_s22 }
  0x21   : > { %s430_s25 = sshll.u32 %s3937_s24, 4  ;;  %s4945_s4 = sld [smem:[#allocation52_spill]]  ;;  %s4090_s25 = int_to_ptr.vmem [resolvable:$true] %s430_s25 }
  0x22   : > { %s4942_s20 = scalar_select %p4075_p3, 1, 0 }
  0x23   : > { %p3235_p4 = pneg %p4075_p3 }
  0x24   : > { %4943 = sst [smem:[#allocation44_spill]] %s4942_s20 }
  0x25   : > { %p4086_p6 = pnand %p3235_p4, %p4911_p1 }
  0x27   : > { %s4944_s23 = scalar_select %p4086_p6, 1, 0 }
  0x28   : > { %s3446_s28 = scalar_lea.hbm %s4945_s4, 1024  ;;  %p4100_p8 = pneg %p4086_p6 }
  0x29   : > { %p3447_p7 = scmp.ne.s32.totalorder %s4945_s4, %s3446_s28  ;;  %p3453_p11 = scmp.lt.u32.totalorder %s3446_s28, %s4945_s4 }
  0x2a   : > { %s4946_s16 = scalar_select %p4100_p8, 1, 0 }
  0x2b   : > { %p3449_p9 = pnand %p4100_p8, %p3447_p7 }
  0x2d   : > { %p3450_p10 = pneg %p3449_p9 }
  0x2f   : > { %p3455_p12 = pnand %p3453_p11, %p3450_p10 }
  0x31   : > { %3458 = shalt.err (!%p3455_p12)
}
  0x32   : > { %s3459_s14 = scalar_lea.vmem %s4079_s22, 1024  ;;  %p3467_p4 = scmp.lt.s32.totalorder %s4079_s22, %s4079_s22 }
  0x33   : > { %p3460_p13 = scmp.ne.s32.totalorder %s4079_s22, %s3459_s14  ;;  %p3468_p5 = scmp.lt.s32.totalorder %s3459_s14, %s3459_s14 }
  0x35   : > { %p3462_p0 = pnand %p3460_p13, %p4100_p8  ;;  %p3469_p7 = por %p3468_p5, %p3467_p4 }
  0x37   : > { %p3463_p2 = pneg %p3462_p0 }
  0x39   : > { %p3470_p9 = pnand %p3469_p7, %p3463_p2 }
  0x3b   : > { %3473 = shalt.err (!%p3470_p9)
}
  0x3c   : > { %s4907_s26 = smov 64   ;;  %s4909_s20 = smov 4  }
  0x3d   : > { %3238 = dma.hbm_to_vmem [thread:$0]  (!%p4086_p6), %s4945_s4, 1024, %s4079_s22, [#allocation14], %s4907_s26, %s4907_s26, %s4909_s20  }
  0x3e   : > { %s4947_s5 = sld [smem:[#allocation53_spill]] }
  0x44   : > { %s3474_s14 = scalar_lea.hbm %s4947_s5, 64 }
  0x45   : > { %p3475_p5 = scmp.ne.s32.totalorder %s4947_s5, %s3474_s14  ;;  %p3481_p12 = scmp.lt.u32.totalorder %s3474_s14, %s4947_s5 }
  0x47   : > { %p3477_p10 = pnand %p3475_p5, %p4100_p8 }
  0x49   : > { %p3478_p11 = pneg %p3477_p10 }
  0x4b   : > { %p3483_p13 = pnand %p3481_p12, %p3478_p11 }
  0x4d   : > { %3486 = shalt.err (!%p3483_p13)
}
  0x4e   : > { %s3487_s22 = scalar_lea.vmem %s4090_s25, 64  ;;  %p3495_p7 = scmp.lt.s32.totalorder %s4090_s25, %s4090_s25 }
  0x4f   : > { %p3488_p0 = scmp.ne.s32.totalorder %s4090_s25, %s3487_s22  ;;  %p3496_p9 = scmp.lt.s32.totalorder %s3487_s22, %s3487_s22 }
  0x51   : > { %p3490_p2 = pnand %p3488_p0, %p4100_p8  ;;  %p3497_p5 = por %p3496_p9, %p3495_p7 }
  0x53   : > { %p3491_p4 = pneg %p3490_p2 }
  0x55   : > { %p3498_p10 = pnand %p3497_p5, %p3491_p4 }
  0x57   : > { %3501 = shalt.err (!%p3498_p10)
}
  0x58   : > { %s3940_s2 = smov 16   ;;  %s3941_s0 = smov 1  }
  0x59   : > { %3241 = dma.hbm_to_vmem [thread:$0]  (!%p4086_p6), %s4947_s5, 64, %s4090_s25, [#allocation17], %s3940_s2, %s3940_s2, %s3941_s0  }
  0x5a   : > { %s3942_s27 = smov [#allocation19]   ;;  %s3943_s21 = smov [#allocation22]  }
  0x5b   : > { %s456_s28 = sshll.u32 %s3942_s27, 4  ;;  %s483_s24 = sshll.u32 %s3943_s21, 4  ;;  %s457_s28 = int_to_ptr.vmem [resolvable:$true] %s456_s28  ;;  %s4147_s24 = int_to_ptr.vmem [resolvable:$true] %s483_s24 }
  0x5c   : > { %s4948_s7 = sld [smem:[#allocation55_spill]] }
  0x62   : > { %s3502_s26 = scalar_lea.hbm %s4948_s7, 64 }
  0x63   : > { %p3503_p11 = scmp.ne.s32.totalorder %s4948_s7, %s3502_s26  ;;  %p3509_p0 = scmp.lt.u32.totalorder %s3502_s26, %s4948_s7 }
  0x65   : > { %p3505_p12 = pnand %p3503_p11, %p4100_p8 }
  0x67   : > { %p3506_p13 = pneg %p3505_p12 }
  0x69   : > { %p3511_p2 = pnand %p3509_p0, %p3506_p13 }
  0x6b   : > { %3514 = shalt.err (!%p3511_p2)
}
  0x6c   : > { %s3515_s13 = scalar_lea.vmem %s457_s28, 64  ;;  %p3523_p5 = scmp.lt.s32.totalorder %s457_s28, %s457_s28 }
  0x6d   : > { %p3516_p4 = scmp.ne.s32.totalorder %s457_s28, %s3515_s13  ;;  %p3524_p10 = scmp.lt.s32.totalorder %s3515_s13, %s3515_s13 }
  0x6f   : > { %p3518_p7 = pnand %p3516_p4, %p4100_p8  ;;  %p3525_p1 = por %p3524_p10, %p3523_p5 }
  0x71   : > { %p3519_p9 = pneg %p3518_p7 }
  0x73   : > { %p3526_p3 = pnand %p3525_p1, %p3519_p9 }
  0x75   : > { %3529 = shalt.err (!%p3526_p3)
}
  0x76   : > { %3247 = dma.hbm_to_vmem [thread:$0]  (!%p4086_p6), %s4948_s7, 64, %s457_s28, [#allocation20], %s3940_s2, %s3940_s2, %s3941_s0  }
  0x77   : > { %s4949_s9 = sld [smem:[#allocation56_spill]] }
  0x7d   : > { %s3530_s21 = scalar_lea.hbm %s4949_s9, 16 }
  0x7e   : > { %p3531_p11 = scmp.ne.s32.totalorder %s4949_s9, %s3530_s21  ;;  %p3537_p1 = scmp.lt.u32.totalorder %s3530_s21, %s4949_s9 }
  0x80   : > { %p3533_p12 = pnand %p3531_p11, %p4100_p8 }
  0x82   : > { %p3534_p13 = pneg %p3533_p12 }
  0x84   : > { %p3539_p3 = pnand %p3537_p1, %p3534_p13 }
  0x86   : > { %3542 = shalt.err (!%p3539_p3)
}
  0x87   : > { %s3543_s2 = scalar_lea.vmem %s4147_s24, 16  ;;  %s3550_s0 = scalar_lea.vmem %s4147_s24, 32 }
  0x88   : > { %p3544_p0 = scmp.ne.s32.totalorder %s4147_s24, %s3543_s2  ;;  %p3551_p7 = scmp.lt.s32.totalorder %s4147_s24, %s4147_s24 }
  0x89   : > { %p3552_p9 = scmp.lt.s32.totalorder %s3550_s0, %s3543_s2 }
  0x8a   : > { %p3546_p2 = pnand %p3544_p0, %p4100_p8 }
  0x8b   : > { %p3553_p5 = por %p3552_p9, %p3551_p7 }
  0x8c   : > { %p3547_p4 = pneg %p3546_p2 }
  0x8e   : > { %p3554_p10 = pnand %p3553_p5, %p3547_p4 }
  0x90   : > { %3557 = shalt.err (!%p3554_p10)
}
  0x91   : > { %3253 = dma.hbm_to_vmem [thread:$0]  (!%p4086_p6), %s4949_s9, 16, %s4147_s24, [#allocation23]  }
  0x92   : > { %s2838_s4 = sadd.s32 4294967294, %s3934_s18   ;;  %s54_s20 = sadd.s32 1, %s3930_s17 }
  0x93   : > { %p56_p11 = scmp.ge.s32.totalorder %s54_s20, 2  ;;  %s61_s26 = sadd.s32 1, %s3922_s15 }
  0x94   : > { %p68_p12 = scmp.ne.s32.totalorder %s3922_s15, %s3918_s30  ;;  %p69_p13 = scmp.eq.s32.totalorder %s3934_s18, 0 }
  0x95   : > { %s5012_s20 = smov (%p56_p11, %s54_s20), 0  ;;  %p74_p3 = scmp.ne.s32.totalorder %s3918_s30, %s3914_s29 }
  0x96   : > { %4950 = sst [smem:[#allocation45_spill]] %s5012_s20  ;;  %p4199_p1 = por %p69_p13, %p68_p12 }
  0x97   : > { %s58_s24 = ssub.s32 %s3930_s17, %s5012_s20  ;;  %p392_p0 = scmp.eq.s32.totalorder %s4070_s19, 1 }
  0x98   : > { %p59_p2 = scmp.eq.s32.totalorder %s58_s24, 0  ;;  %p4952_p4 = scmp.eq.s32.totalorder %s4070_s19, 0 }
  0x99   : > { %p4214_p9 = por %p392_p0, %p68_p12  ;;  %p398_p5 = scmp.eq.s32.totalorder %s2838_s4, 1 }
  0x9a   : > { %p4210_p7 = por %p4952_p4, %p74_p3  ;;  %p3293_p11 = scmp.lt.s32.totalorder %s3934_s18, 2 }
  0x9b   : > { %s4954_s14 = scalar_select %p4214_p9, 1, 0 }
  0x9c   : > { %s4953_s21 = scalar_select %p4210_p7, 1, 0 }
  0x9d   : > { %s4219_s22 = scalar_select %p59_p2, %s3922_s15, %s61_s26  }
  0x9e   : > { %p4221_p10 = por %p398_p5, %p74_p3  ;;  %s4227_s25 = sand.u32 1, %s3922_s15  }
  0x9f   : > { %4955 = sst [smem:[#allocation46_spill]] %s4219_s22  ;;  %s4915_s2 = sshll.u32 %s3930_s17, 7 }
  0xa0   : > { %s4956_s3 = scalar_select %p4221_p10, 1, 0 }
  0xa1   : > { %s4914_s0 = sshll.u32 %s4227_s25, 3  ;;  %p4233_p13 = pnand %p3293_p11, %p4199_p1 }
  0xa2   : > { %4957 = sst [smem:[#allocation47_spill]] %s4956_s3  ;;  %s4917_s13 = sand.u32 1, %s3934_s18  }
  0xa3   : > { %s4958_s28 = scalar_select %p4233_p13, 1, 0 }
  0xa4   : > { %s4959_s1 = sld [smem:[#allocation49_spill]]  ;;  %s558_s5 = scalar_lea.vmem [#allocation10], %s4914_s0 }
  0xa5   : > { %s565_s7 = sshll.u32 %s558_s5, 4  ;;  %s4251_s27 = scalar_lea.sflag [#allocation11], %s4917_s13  ;;  %s4247_s7 = int_to_ptr.vmem [resolvable:$true] %s565_s7 }
  0xa6   : > { %p4257_p1 = pneg %p4233_p13 }
  0xa8   : > { %s4960_s20 = scalar_select %p4257_p1, 1, 0 }
  0xaa   : > { %s4243_s24 = scalar_lea.hbm %s4959_s1, %s4915_s2  ;;  %s3563_s5 = scalar_lea.hbm %s4959_s1, 256 }
  0xab   : > { %s3558_s9 = scalar_lea.hbm %s4243_s24, 128  ;;  %p3564_p2 = scmp.lt.u32.totalorder %s4243_s24, %s4959_s1 }
  0xac   : > { %p3559_p12 = scmp.ne.s32.totalorder %s4243_s24, %s3558_s9  ;;  %p3565_p4 = scmp.lt.u32.totalorder %s3563_s5, %s3558_s9 }
  0xad   : > { %p3567_p11 = scmp.lt.u32.totalorder %s3558_s9, %s4243_s24 }
  0xae   : > { %p3561_p3 = pnand %p4257_p1, %p3559_p12  ;;  %p3566_p5 = por %p3565_p4, %p3564_p2 }
  0xb0   : > { %p3562_p0 = pneg %p3561_p3  ;;  %p3568_p10 = por %p3567_p11, %p3566_p5 }
  0xb2   : > { %p3569_p9 = pnand %p3568_p10, %p3562_p0 }
  0xb4   : > { %3572 = shalt.err (!%p3569_p9)
}
  0xb5   : > { %s3573_s13 = scalar_lea.vmem %s4247_s7, 128  ;;  %s3944_s4 = smov [#allocation10]  }
  0xb6   : > { %p3574_p12 = scmp.ne.s32.totalorder %s4247_s7, %s3573_s13  ;;  %s3578_s26 = sshll.u32 %s3944_s4, 4  ;;  %s3579_s26 = int_to_ptr.vmem [resolvable:$false] %s3578_s26 }
  0xb7   : > { %s3580_s2 = scalar_lea.vmem %s3579_s26, 256  ;;  %p3581_p6 = scmp.lt.s32.totalorder %s4247_s7, %s3579_s26 }
  0xb8   : > { %p3576_p3 = pnand %p3574_p12, %p4257_p1  ;;  %p3582_p8 = scmp.lt.s32.totalorder %s3580_s2, %s3573_s13 }
  0xba   : > { %p3577_p7 = pneg %p3576_p3  ;;  %p3583_p2 = por %p3582_p8, %p3581_p6 }
  0xbc   : > { %p3584_p4 = pnand %p3583_p2, %p3577_p7 }
  0xbe   : > { %3587 = shalt.err (!%p3584_p4)
}
  0xbf   : > { %3272 = dma.hbm_to_vmem [thread:$0]  (!%p4233_p13), %s4243_s24, 128, %s4247_s7, %s4251_s27  }
  0xc0   : > { %s3945_s9 = smov [#allocation18]   ;;  %s3946_s5 = smov [#allocation21]  }
  0xc1   : > { %s443_s0 = sshll.u32 %s3945_s9, 4  ;;  %s469_s1 = sshll.u32 %s3946_s5, 4  ;;  %s444_s0 = int_to_ptr.vmem [resolvable:$true] %s443_s0  ;;  %s4281_s1 = int_to_ptr.vmem [resolvable:$true] %s469_s1 }
  0xc2   : > { %s4961_s6 = sld [smem:[#allocation54_spill]]  ;;  %p4962_p8 = scmp.ne.s32.totalorder %s4946_s16, 0 }
  0xc8   : > { %s3588_s13 = scalar_lea.hbm %s4961_s6, 1024 }
  0xc9   : > { %p3589_p6 = scmp.ne.s32.totalorder %s4961_s6, %s3588_s13  ;;  %p3595_p10 = scmp.lt.u32.totalorder %s3588_s13, %s4961_s6 }
  0xcb   : > { %p3591_p7 = pnand %p3589_p6, %p4962_p8 }
  0xcd   : > { %p3592_p9 = pneg %p3591_p7 }
  0xcf   : > { %p3597_p0 = pnand %p3595_p10, %p3592_p9 }
  0xd1   : > { %3600 = shalt.err (!%p3597_p0)
}
  0xd2   : > { %s3601_s24 = scalar_lea.vmem %s444_s0, 1024  ;;  %p3609_p3 = scmp.lt.s32.totalorder %s444_s0, %s444_s0 }
  0xd3   : > { %p3602_p5 = scmp.ne.s32.totalorder %s444_s0, %s3601_s24  ;;  %p3610_p2 = scmp.lt.s32.totalorder %s3601_s24, %s3601_s24 }
  0xd5   : > { %p3604_p11 = pnand %p3602_p5, %p4962_p8  ;;  %p3611_p4 = por %p3610_p2, %p3609_p3 }
  0xd7   : > { %p3605_p12 = pneg %p3604_p11 }
  0xd9   : > { %p3612_p13 = pnand %p3611_p4, %p3605_p12 }
  0xdb   : > { %3615 = shalt.err (!%p3612_p13)
}
  0xdc   : > { %p4963_p6 = scmp.ne.s32.totalorder %s4944_s23, 0  ;;  %s4964_s22 = smov 4  }
  0xdd   : > { %s4965_s9 = smov 64   ;;  %s3616_s13 = scalar_lea.hbm %s4894_s8, 256 }
  0xde   : > { %3244 = dma.hbm_to_vmem [thread:$0]  (!%p4963_p6), %s4961_s6, 1024, %s444_s0, [#allocation17], %s4965_s9, %s4965_s9, %s4964_s22  }
  0xdf   : > { %p3617_p7 = scmp.ne.s32.totalorder %s4894_s8, %s3616_s13  ;;  %p3623_p10 = scmp.lt.u32.totalorder %s3616_s13, %s4894_s8 }
  0xe1   : > { %p3619_p13 = pnand %p3617_p7, %p4962_p8 }
  0xe3   : > { %p3620_p9 = pneg %p3619_p13 }
  0xe5   : > { %p3625_p0 = pnand %p3623_p10, %p3620_p9 }
  0xe7   : > { %3628 = shalt.err (!%p3625_p0)
}
  0xe8   : > { %s3629_s0 = scalar_lea.vmem %s4281_s1, 256  ;;  %p3637_p3 = scmp.lt.s32.totalorder %s4281_s1, %s4281_s1 }
  0xe9   : > { %p3630_p5 = scmp.ne.s32.totalorder %s4281_s1, %s3629_s0  ;;  %p3638_p2 = scmp.lt.s32.totalorder %s3629_s0, %s3629_s0 }
  0xeb   : > { %p3632_p11 = pnand %p3630_p5, %p4962_p8  ;;  %p3639_p4 = por %p3638_p2, %p3637_p3 }
  0xed   : > { %p3633_p12 = pneg %p3632_p11 }
  0xef   : > { %p3640_p7 = pnand %p3639_p4, %p3633_p12 }
  0xf1   : > { %3643 = shalt.err (!%p3640_p7)
}
  0xf2   : > { %3250 = dma.hbm_to_vmem [thread:$0]  (!%p4963_p6), %s4894_s8, 256, %s4281_s1, [#allocation20], %s4965_s9, %s4965_s9, %s4964_s22  }
  0xf3   : > { %s3947_s5 = smov [#allocation24]   ;;  %s3948_s26 = smov [#allocation25]  }
  0xf4   : > { %s493_s4 = sshll.u32 %s3947_s5, 4  ;;  %s507_s13 = sshll.u32 %s3948_s26, 4  ;;  %s494_s4 = int_to_ptr.vmem [resolvable:$true] %s493_s4  ;;  %s4330_s13 = int_to_ptr.vmem [resolvable:$true] %s507_s13 }
  0xf5   : > { %s3644_s24 = scalar_lea.hbm %s4896_s10, 512 }
  0xf6   : > { %p3645_p13 = scmp.ne.s32.totalorder %s4896_s10, %s3644_s24  ;;  %p3651_p0 = scmp.lt.u32.totalorder %s3644_s24, %s4896_s10 }
  0xf8   : > { %p3647_p9 = pnand %p3645_p13, %p4962_p8 }
  0xfa   : > { %p3648_p10 = pneg %p3647_p9 }
  0xfc   : > { %p3653_p5 = pnand %p3651_p0, %p3648_p10 }
  0xfe   : > { %3656 = shalt.err (!%p3653_p5)
}
  0xff   : > { %s3657_s15 = scalar_lea.vmem %s494_s4, 512  ;;  %p3665_p2 = scmp.lt.s32.totalorder %s494_s4, %s494_s4 }
 0x100   : > { %p3658_p11 = scmp.ne.s32.totalorder %s494_s4, %s3657_s15  ;;  %p3666_p4 = scmp.lt.s32.totalorder %s3657_s15, %s3657_s15 }
 0x102   : > { %p3660_p12 = pnand %p3658_p11, %p4962_p8  ;;  %p3667_p7 = por %p3666_p4, %p3665_p2 }
 0x104   : > { %p3661_p3 = pneg %p3660_p12 }
 0x106   : > { %p3668_p1 = pnand %p3667_p7, %p3661_p3 }
 0x108   : > { %3671 = shalt.err (!%p3668_p1)
}
 0x109   : > { %3256 = dma.hbm_to_vmem [thread:$0]  (!%p4963_p6), %s4896_s10, 512, %s494_s4, [#allocation23], %s4965_s9, %s4965_s9, %s4964_s22  }
 0x10a   : > { %s3672_s7 = scalar_lea.hbm %s4897_s11, 16 }
 0x10b   : > { %p3673_p13 = scmp.ne.s32.totalorder %s4897_s11, %s3672_s7  ;;  %p3679_p10 = scmp.lt.u32.totalorder %s3672_s7, %s4897_s11 }
 0x10d   : > { %p3675_p1 = pnand %p3673_p13, %p4962_p8 }
 0x10f   : > { %p3676_p9 = pneg %p3675_p1 }
 0x111   : > { %p3681_p0 = pnand %p3679_p10, %p3676_p9 }
 0x113   : > { %3684 = shalt.err (!%p3681_p0)
}
 0x114   : > { %s3685_s22 = scalar_lea.vmem %s4330_s13, 16  ;;  %s3692_s9 = scalar_lea.vmem %s4330_s13, 32 }
 0x115   : > { %p3686_p5 = scmp.ne.s32.totalorder %s4330_s13, %s3685_s22  ;;  %p3693_p3 = scmp.lt.s32.totalorder %s4330_s13, %s4330_s13 }
 0x116   : > { %p3694_p2 = scmp.lt.s32.totalorder %s3692_s9, %s3685_s22 }
 0x117   : > { %p3688_p11 = pnand %p3686_p5, %p4962_p8 }
 0x118   : > { %p3695_p4 = por %p3694_p2, %p3693_p3 }
 0x119   : > { %p3689_p12 = pneg %p3688_p11 }
 0x11b   : > { %p3696_p7 = pnand %p3695_p4, %p3689_p12 }
 0x11d   : > { %3699 = shalt.err (!%p3696_p7)
}
 0x11e   : > { %3259 = dma.hbm_to_vmem [thread:$0]  (!%p4963_p6), %s4897_s11, 16, %s4330_s13, [#allocation26]  }
 0x11f   : > { %s3700_s26 = scalar_lea.hbm %s4898_s12, 16 }
 0x120   : > { %p3701_p13 = scmp.ne.s32.totalorder %s4898_s12, %s3700_s26  ;;  %p3707_p10 = scmp.lt.u32.totalorder %s3700_s26, %s4898_s12 }
 0x122   : > { %p3703_p1 = pnand %p3701_p13, %p4962_p8 }
 0x124   : > { %p3704_p9 = pneg %p3703_p1 }
 0x126   : > { %p3709_p0 = pnand %p3707_p10, %p3704_p9 }
 0x128   : > { %3712 = shalt.err (!%p3709_p0)
}
 0x129   : > { %s3949_s3 = smov [#allocation27]   ;;  %s4966_s4 = sld [smem:[#allocation57_spill]] }
 0x12a   : > { %3262 = dma.hbm_to_smem (!%p4963_p6), %s4898_s12, 16, %s3949_s3, [#allocation9]  }
 0x12f   : > { %s3713_s15 = scalar_lea.hbm %s4966_s4, 16 }
 0x130   : > { %p3714_p5 = scmp.ne.s32.totalorder %s4966_s4, %s3713_s15  ;;  %p3720_p3 = scmp.lt.u32.totalorder %s3713_s15, %s4966_s4 }
 0x132   : > { %p3716_p11 = pnand %p3714_p5, %p4962_p8 }
 0x134   : > { %p3717_p12 = pneg %p3716_p11 }
 0x136   : > { %p3722_p2 = pnand %p3720_p3, %p3717_p12 }
 0x138   : > { %3725 = shalt.err (!%p3722_p2)
}
 0x139   : > { %s3950_s7 = smov [#allocation28]   ;;  %s4967_s16 = sshll.u32 %s3930_s17, 7 }
 0x13a   : > { %3265 = dma.hbm_to_smem (!%p4963_p6), %s4966_s4, 16, %s3950_s7, [#allocation29]  }
 0x13b   : > { %s4968_s1 = sld [smem:[#allocation48_spill]]  ;;  %s4969_s9 = sshll.u32 %s4227_s25, 3 }
 0x13c   : > { %s540_s23 = scalar_lea.vmem [#allocation6], %s4969_s9  ;;  %s2855_s6 = sshll.u32 %s4227_s25, 2 }
 0x13d   : > { %s547_s15 = sshll.u32 %s540_s23, 4  ;;  %s537_s5 = scalar_lea.sflag [#allocation7], %s4227_s25  ;;  %s4418_s15 = int_to_ptr.vmem [resolvable:$true] %s547_s15 }
 0x13e   : > { %p4970_p6 = scmp.ne.s32.totalorder %s4960_s20, 0 }
 0x141   : > { %s4414_s22 = scalar_lea.hbm %s4968_s1, %s4967_s16  ;;  %s3731_s24 = scalar_lea.hbm %s4968_s1, 256 }
 0x142   : > { %s3726_s26 = scalar_lea.hbm %s4414_s22, 128  ;;  %p3732_p13 = scmp.lt.u32.totalorder %s4414_s22, %s4968_s1 }
 0x143   : > { %p3727_p8 = scmp.ne.s32.totalorder %s4414_s22, %s3726_s26  ;;  %p3733_p1 = scmp.lt.u32.totalorder %s3731_s24, %s3726_s26 }
 0x144   : > { %p3735_p10 = scmp.lt.u32.totalorder %s3726_s26, %s4414_s22 }
 0x145   : > { %p3729_p4 = pnand %p3727_p8, %p4970_p6  ;;  %p3734_p9 = por %p3733_p1, %p3732_p13 }
 0x147   : > { %p3730_p7 = pneg %p3729_p4  ;;  %p3736_p0 = por %p3735_p10, %p3734_p9 }
 0x149   : > { %p3737_p5 = pnand %p3736_p0, %p3730_p7 }
 0x14b   : > { %3740 = shalt.err (!%p3737_p5)
}
 0x14c   : > { %s3741_s3 = scalar_lea.vmem %s4418_s15, 128  ;;  %s3951_s13 = smov [#allocation6]  }
 0x14d   : > { %p3742_p11 = scmp.ne.s32.totalorder %s4418_s15, %s3741_s3  ;;  %s3746_s9 = sshll.u32 %s3951_s13, 4  ;;  %s3747_s9 = int_to_ptr.vmem [resolvable:$false] %s3746_s9 }
 0x14e   : > { %s3748_s23 = scalar_lea.vmem %s3747_s9, 256  ;;  %p3749_p2 = scmp.lt.s32.totalorder %s4418_s15, %s3747_s9 }
 0x14f   : > { %p3744_p12 = pnand %p3742_p11, %p4970_p6  ;;  %p3750_p8 = scmp.lt.s32.totalorder %s3748_s23, %s3741_s3 }
 0x151   : > { %p3745_p3 = pneg %p3744_p12  ;;  %p3751_p4 = por %p3750_p8, %p3749_p2 }
 0x153   : > { %p3752_p13 = pnand %p3751_p4, %p3745_p3 }
 0x155   : > { %3755 = shalt.err (!%p3752_p13)
}
 0x156   : > { %p4971_p7 = scmp.ne.s32.totalorder %s4958_s28, 0  ;;  %s2856_s26 = sshll.u32 %s3930_s17, 6 }
 0x157   : > { %s4972_s24 = sld [smem:[#allocation50_spill]]  ;;  %s576_s16 = scalar_lea.vmem [#allocation12], %s2855_s6 }
 0x158   : > { %3269 = dma.hbm_to_vmem [thread:$0]  (!%p4971_p7), %s4414_s22, 128, %s4418_s15, %s537_s5  }
 0x159   : > { %s584_s3 = sshll.u32 %s576_s16, 4  ;;  %s585_s3 = int_to_ptr.vmem [resolvable:$true] %s584_s3 }
 0x15d   : > { %s4449_s0 = scalar_lea.hbm %s4972_s24, %s2856_s26  ;;  %s3761_s5 = scalar_lea.hbm %s4972_s24, 128 }
 0x15e   : > { %s3756_s13 = scalar_lea.hbm %s4449_s0, 64  ;;  %p3762_p0 = scmp.lt.u32.totalorder %s4449_s0, %s4972_s24 }
 0x15f   : > { %p3757_p1 = scmp.ne.s32.totalorder %s4449_s0, %s3756_s13  ;;  %p3763_p5 = scmp.lt.u32.totalorder %s3761_s5, %s3756_s13 }
 0x160   : > { %p3765_p12 = scmp.lt.u32.totalorder %s3756_s13, %s4449_s0 }
 0x161   : > { %p3759_p9 = pnand %p3757_p1, %p4970_p6  ;;  %p3764_p11 = por %p3763_p5, %p3762_p0 }
 0x163   : > { %p3760_p10 = pneg %p3759_p9  ;;  %p3766_p3 = por %p3765_p12, %p3764_p11 }
 0x165   : > { %p3767_p2 = pnand %p3766_p3, %p3760_p10 }
 0x167   : > { %3770 = shalt.err (!%p3767_p2)
}
 0x168   : > { %s3771_s2 = scalar_lea.vmem %s585_s3, 64  ;;  %s3952_s7 = smov [#allocation12]  }
 0x169   : > { %p3772_p8 = scmp.ne.s32.totalorder %s585_s3, %s3771_s2  ;;  %s3776_s16 = sshll.u32 %s3952_s7, 4  ;;  %s3777_s16 = int_to_ptr.vmem [resolvable:$false] %s3776_s16 }
 0x16a   : > { %s3778_s22 = scalar_lea.vmem %s3777_s16, 128  ;;  %p3779_p1 = scmp.lt.s32.totalorder %s585_s3, %s3777_s16 }
 0x16b   : > { %p3774_p4 = pnand %p3772_p8, %p4970_p6  ;;  %p3780_p9 = scmp.lt.s32.totalorder %s3778_s22, %s3771_s2 }
 0x16d   : > { %p3775_p13 = pneg %p3774_p4  ;;  %p3781_p7 = por %p3780_p9, %p3779_p1 }
 0x16f   : > { %p3782_p0 = pnand %p3781_p7, %p3775_p13 }
 0x171   : > { %3785 = shalt.err (!%p3782_p0)
}
 0x172   : > { %p4973_p5 = scmp.ne.s32.totalorder %s4958_s28, 0  ;;  %s4974_s5 = sld [smem:[#allocation51_spill]] }
 0x173   : > { %s595_s23 = scalar_lea.vmem [#allocation13], %s2855_s6  ;;  %s4975_s7 = sand.u32 1, %s3934_s18  }
 0x174   : > { %3275 = dma.hbm_to_vmem [thread:$0]  (!%p4973_p5), %s4449_s0, 64, %s585_s3, %s4251_s27  }
 0x175   : > { %s603_s2 = sshll.u32 %s595_s23, 4  ;;  %s592_s16 = scalar_lea.sflag [#allocation14], %s4975_s7  ;;  %s604_s2 = int_to_ptr.vmem [resolvable:$true] %s603_s2 }
 0x178   : > { %s4476_s9 = scalar_lea.hbm %s4974_s5, %s2856_s26  ;;  %s3791_s26 = scalar_lea.hbm %s4974_s5, 128 }
 0x179   : > { %s3786_s22 = scalar_lea.hbm %s4476_s9, 64  ;;  %p3792_p12 = scmp.lt.u32.totalorder %s4476_s9, %s4974_s5 }
 0x17a   : > { %p3787_p7 = scmp.ne.s32.totalorder %s4476_s9, %s3786_s22  ;;  %p3793_p3 = scmp.lt.u32.totalorder %s3791_s26, %s3786_s22 }
 0x17b   : > { %p3795_p8 = scmp.lt.u32.totalorder %s3786_s22, %s4476_s9 }
 0x17c   : > { %p3789_p10 = pnand %p3787_p7, %p4970_p6  ;;  %p3794_p2 = por %p3793_p3, %p3792_p12 }
 0x17e   : > { %p3790_p11 = pneg %p3789_p10  ;;  %p3796_p4 = por %p3795_p8, %p3794_p2 }
 0x180   : > { %p3797_p13 = pnand %p3796_p4, %p3790_p11 }
 0x182   : > { %3800 = shalt.err (!%p3797_p13)
}
 0x183   : > { %s3801_s6 = scalar_lea.vmem %s604_s2, 64  ;;  %s3953_s13 = smov [#allocation13]  }
 0x184   : > { %p3802_p1 = scmp.ne.s32.totalorder %s604_s2, %s3801_s6  ;;  %s3806_s15 = sshll.u32 %s3953_s13, 4  ;;  %s3807_s15 = int_to_ptr.vmem [resolvable:$false] %s3806_s15 }
 0x185   : > { %s3808_s23 = scalar_lea.vmem %s3807_s15, 128  ;;  %p3809_p7 = scmp.lt.s32.totalorder %s604_s2, %s3807_s15 }
 0x186   : > { %p3804_p9 = pnand %p3802_p1, %p4970_p6  ;;  %p3810_p10 = scmp.lt.s32.totalorder %s3808_s23, %s3801_s6 }
 0x188   : > { %p3805_p0 = pneg %p3804_p9  ;;  %p3811_p5 = por %p3810_p10, %p3809_p7 }
 0x18a   : > { %p3812_p3 = pnand %p3811_p5, %p3805_p0 }
 0x18c   : > { %3815 = shalt.err (!%p3812_p3)
}
 0x18d   : > { %p4976_p12 = scmp.ne.s32.totalorder %s4958_s28, 0  ;;  %s4977_s7 = sld [smem:[#allocation44_spill]] }
 0x18f   : > { %3278 = dma.hbm_to_vmem [thread:$0]  (!%p4976_p12), %s4476_s9, 64, %s604_s2, %s592_s16  }
 0x193   : > { %p4978_p11 = scmp.ne.s32.totalorder %s4977_s7, 0 }
 0x194   : > { %s4502_s20 = sand.u32 (!%p4978_p11), 1, %s3918_s30   ;;  %p4979_p6 = scmp.ne.s32.totalorder (!%p4978_p11), %s4953_s21, 0 }
 0x195   : > { %612 = sbr.rel (%p4978_p11) target bundleno = 4820 (0x12d4), region = 76  ;;  %s4505_s22 = sshll.u32 (!%p4978_p11), %s4502_s20, 3 }
 0x196   : > { %s615_s27 = scalar_lea.sflag (!%p4978_p11), [#allocation7], %s4502_s20  ;;  %s618_s0 = scalar_lea.vmem (!%p4978_p11), [#allocation6], %s4505_s22 }
 0x19c   : > { %3869 = dma.done.wait (%p4979_p6), %s615_s27, 128  }
 0x19d   : > { %3871 = vsyncadd (%p4979_p6), %s615_s27, 4294967168  ;;  %s623_s28 = sand.u32 1, %s4070_s19   ;;  %s627_s2 = scalar_lea.vmem [#allocation10], %s4505_s22 }
 0x19e   : > { %s624_s9 = scalar_lea.sflag [#allocation11], %s623_s28 }
 0x19f   : > { %3873 = dma.done.wait (%p4979_p6), %s624_s9, 192  }
 0x1a0   : > { %3875 = vsyncadd (%p4979_p6), %s624_s9, 4294967104  ;;  %s2862_s16 = sshll.u32 %s4502_s20, 2  ;;  %s642_s3 = scalar_lea.sflag [#allocation14], %s623_s28 }
 0x1a1   : > { %s4520_s26 = scalar_lea.vmem [#allocation12], %s2862_s16  ;;  %s4522_s25 = scalar_lea.vmem [#allocation13], %s2862_s16 }
 0x1a2   : > { %3877 = dma.done.wait (%p4979_p6), %s642_s3, 64  }
 0x1a3   : > { %3879 = vsyncadd (%p4979_p6), %s642_s3, 4294967232  ;;  %p4980_p5 = scmp.eq.s32.totalorder %s4070_s19, 0 }
 0x1a5   : > { %3881 = dma.done.wait (%p4980_p5), [#allocation14], 1024   ;;  %p4981_p2 = pmov %p4980_p5 }
 0x1a7   : > { %3883 = vsyncadd (%p4981_p2), [#allocation14], 4294966272  ;;  %p4982_p8 = pmov %p4981_p2 }
 0x1a8   : > { %p4983_p4 = pmov %p4981_p2 }
 0x1a9   : > { %3885 = dma.done.wait (%p4982_p8), [#allocation17], 1088  }
 0x1aa   : > { %3887 = vsyncadd (%p4983_p4), [#allocation17], 4294966208  ;;  %p4984_p13 = pmov %p4981_p2 }
 0x1ab   : > { %p4985_p1 = pmov %p4981_p2 }
 0x1ac   : > { %3889 = dma.done.wait (%p4984_p13), [#allocation20], 320  }
 0x1ad   : > { %3891 = vsyncadd (%p4985_p1), [#allocation20], 4294966976  ;;  %p4986_p9 = pmov %p4985_p1 }
 0x1ae   : > { %p4987_p0 = pmov %p4985_p1 }
 0x1af   : > { %3893 = dma.done.wait (%p4986_p9), [#allocation23], 528  }
 0x1b0   : > { %3895 = vsyncadd (%p4987_p0), [#allocation23], 4294966768  ;;  %p4988_p7 = pmov %p4987_p0 }
 0x1b1   : > { %p4989_p10 = pmov %p4987_p0 }
 0x1b2   : > { %3897 = dma.done.wait (%p4988_p7), [#allocation26], 16  }
 0x1b3   : > { %3899 = vsyncadd (%p4989_p10), [#allocation26], 4294967280  ;;  %p4990_p3 = pmov %p4987_p0 }
 0x1b4   : > { %p4991_p12 = pmov %p4987_p0 }
 0x1b5   : > { %3901 = dma.done.wait (%p4990_p3), [#allocation9], 16  }
 0x1b6   : > { %3903 = vsyncadd (%p4991_p12), [#allocation9], 4294967280  ;;  %p4992_p11 = pmov %p4987_p0 }
 0x1b7   : > { %p4993_p6 = pmov %p4987_p0 }
 0x1b8   : > { %3905 = dma.done.wait (%p4992_p11), [#allocation29], 16  }
 0x1b9   : > { %3907 = vsyncadd (%p4993_p6), [#allocation29], 4294967280 }
 0x1ba   : > { %690 = sfence }
 0x1bb   : > { %v4556_v0 = vld [vmem:[%s618_s0] sm:$0xff]  ;;  %vm756_vm0 = vcmask 261120   ;;  %v3377_v13 = vld [vmem:[#allocation15 + $0x20] sm:$0xff]   ;;  %v3954_v14 = vmov 0.0   ;;  %v3379_v16 = vld [vmem:[#allocation15 + $0x28] sm:$0xff]   ;;  %vm3955_vm1 = vmmov 0  }
 0x1bc   : > { %v757_v1 = vsel %vm756_vm0, %v4556_v0, 0.0  ;;  %v3376_v12 = vld [vmem:[#allocation15 + $0x10] sm:$0xff]   ;;  %3005 = vmatprep.subr.bf16.mxu0 %v3954_v14  ;;  %3013 = vmatprep.subr.bf16.mxu1 %v3954_v14  ;;  %v3378_v15 = vld [vmem:[#allocation15 + $0x18] sm:$0xff]   ;;  %s754_s19 = sld [smem:[#allocation27]]  ;;  %v953_v42 = vld [vmem:[%s627_s2] sm:$0xff]  ;;  %vm930_vm6 = vcmask 60416  }
 0x1bd   : > { %758 = vadd.xlane.f32.xlu0 %v757_v1  ;;  %3006 = vmatpush3.bf16.msra.mxu0 %v3376_v12  ;;  %s4578_s21 = sld [smem:[#allocation28]]  ;;  %v3380_v39 = vld [vmem:[#allocation18 + $0x10] sm:$0xff]   ;;  %v3381_v41 = vld [vmem:[#allocation18 + $0x18] sm:$0xff]   ;;  %v954_v45 = vpack.c.bf16 %v953_v42, %v953_v42  ;;  %v3383_v48 = vld [vmem:[#allocation15 + $0x8] sm:$0xff]   ;;  %s3956_s6 = smov 120   ;;  %vm1242_vm7 = vcmask 64512  }
 0x1be   : > { %3014 = vmatpush3.bf16.msra.mxu1 %v3377_v13  ;;  %3007 = vmatprep.subr.bf16.mxu0 %v3954_v14  ;;  %v3382_v46 = vld [vmem:[#allocation15] sm:$0xff]   ;;  %v3385_v52 = vld [vmem:[#allocation18 + $0x28] sm:$0xff]   ;;  %s3957_s13 = smov 112   ;;  %s3958_s15 = smov 104   ;;  %vm1496_vm8 = vcmask 1043456   ;;  %vm1691_vm11 = vcmask 130048  }
 0x1bf   : > { %3015 = vmatprep.subr.bf16.mxu1 %v3954_v14  ;;  %3009 = vmatprep.mubr.msk.bf16.mxu0 %vm3955_vm1, %v3954_v14  ;;  %v3384_v51 = vld [vmem:[#allocation18 + $0x20] sm:$0xff]   ;;  %v2875_v53 = vld [vmem:[#allocation16 + $0x1] ss:$0 sm:$0xff]  ;;  %v2879_v54 = vld [vmem:[#allocation16 + $0x2] ss:$0 sm:$0xff]  ;;  %s3960_s23 = smov 16  }
 0x1c0   : > { %3017 = vmatprep.mubr.msk.bf16.mxu1 %vm3955_vm1, %v3954_v14  ;;  %v2891_v13 = vld [vmem:[#allocation16] ss:$0 sm:$0xff]  ;;  %s3961_s7 = smov 8   ;;  %s3962_s27 = smov 24   ;;  %vm1693_vm12 = vcmask 195584  }
 0x1c1   : > { %1133 = vadd.xlane.f32.xlu0 %v757_v1  ;;  %3008 = vmatpush3.bf16.msra.mxu0 %v3378_v15  ;;  %s2907_s0 = sld [smem:[#allocation27 + $0x1]]  ;;  %s2925_s9 = sld [smem:[#allocation27 + $0x2]] }
 0x1c2   : > { %3016 = vmatpush3.bf16.msra.mxu1 %v3379_v16  ;;  %3021 = vmatprep.subr.bf16.mxu0 %v3954_v14  ;;  %v775_v32 = vstv %s754_s19  ;;  %s2908_s28 = sld [smem:[#allocation28 + $0x1]]  ;;  %s2926_s2 = sld [smem:[#allocation28 + $0x2]] }
 0x1c3   : > { %3029 = vmatprep.subr.bf16.mxu1 %v3954_v14  ;;  %v780_v36 = vstv %s4578_s21  ;;  %s4998_s16 = sld [smem:[#allocation43_spill]]  ;;  %s745_s3 = scalar_lea.vmem [#allocation30], %s4505_s22 }
 0x1c4   : > { %s2576_s22 = scalar_lea.sflag [#allocation8], %s4502_s20  ;;  %p5000_p2 = scmp.ne.s32.totalorder %s4954_s14, 0 }
 0x24a   : > { %v759_v2 = vpop.xlane.xlu0 %758 }
 0x24b   : > { %v761_v3 = vmul.f32 0.03125, %v759_v2 }
 0x24d   : > { %v762_v4 = vsub.f32 %v4556_v0, %v761_v3 }
 0x24e   : > { %v1134_v5 = vpop.xlane.xlu0 %1133 }
 0x24f   : > { %v1136_v6 = vmul.f32 0.03125, %v1134_v5  ;;  %v763_v7 = vmul.f32 %v762_v4, %v762_v4  ;;  %v776_v34 = vmul.f32 %v775_v32, %v762_v4  ;;  %v2883_v4 = vld [vmem:[#allocation19 + $0x1] ss:$0 sm:$0xff] }
 0x251   : > { %v4562_v8 = vsub.f32 %v4556_v0, %v1136_v6  ;;  %v764_v9 = vsel %vm756_vm0, %v763_v7, 0.0 }
 0x252   : > { %765 = vadd.xlane.f32.xlu1 %v764_v9 }
 0x253   : > { %v1138_v10 = vmul.f32 %v4562_v8, %v4562_v8  ;;  %v1151_v44 = vmul.f32 %v4562_v8, %v775_v32 }
 0x255   : > { %v1139_v11 = vsel %vm756_vm0, %v1138_v10, 0.0 }
 0x256   : > { %1140 = vadd.xlane.f32.xlu1 %v1139_v11 }
 0x2df   : > { %v766_v17 = vpop.xlane.xlu1 %765 }
 0x2e0   : > { %v767_v18 = vmul.f32 0.032258064, %v766_v17 }
 0x2e2   : > { %3398 = vrsqrt.f32 %v767_v18  ;;  %vm770_vm2 = vcmp.eq.f32.partialorder %v767_v18, inf  ;;  %v773_v23 = vand.u32 2147483648, %v767_v18  ;;  %vm772_vm3 = vcmp.eq.f32.partialorder %v767_v18, 0.0 }
 0x2e3   : > { %v1141_v19 = vpop.xlane.xlu1 %1140 }
 0x2e4   : > { %v1142_v20 = vmul.f32 0.032258064, %v1141_v19 }
 0x2e6   : > { %3400 = vrsqrt.f32 %v1142_v20  ;;  %vm1145_vm4 = vcmp.eq.f32.partialorder %v1142_v20, inf  ;;  %v1148_v29 = vand.u32 2147483648, %v1142_v20  ;;  %vm1147_vm5 = vcmp.eq.f32.partialorder %v1142_v20, 0.0 }
 0x2ec   : > { %v3399_v21 = vpop.eup %3398 }
 0x2ed   : > { %v769_v22 = vmul.f32 %v3399_v21, %v767_v18  ;;  %v2887_v21 = vld [vmem:[#allocation19 + $0x2] ss:$0 sm:$0xff] }
 0x2ef   : > { %v771_v24 = vsel %vm770_vm2, %v767_v18, %v769_v22 }
 0x2f0   : > { %v3401_v25 = vpop.eup %3400  ;;  %v774_v26 = vsel %vm772_vm3, %v773_v23, %v771_v24 }
 0x2f1   : > { %v777_v27 = vadd.f32 1e-06, %v774_v26  ;;  %v1144_v28 = vmul.f32 %v3401_v25, %v1142_v20 }
 0x2f3   : > { %v1146_v30 = vsel %vm1145_vm4, %v1142_v20, %v1144_v28  ;;  %3402 = vrcp.f32 %v777_v27  ;;  %vm2529_vm4 = vcmask 523264  }
 0x2f4   : > { %v1149_v31 = vsel %vm1147_vm5, %v1148_v29, %v1146_v30 }
 0x2f5   : > { %v1152_v33 = vadd.f32 1e-06, %v1149_v31 }
 0x2f7   : > { %3404 = vrcp.f32 %v1152_v33 }
 0x2fd   : > { %v3403_v35 = vpop.eup %3402 }
 0x2fe   : > { %v779_v37 = vmul.f32 %v3403_v35, %v776_v34 }
 0x300   : > { %v781_v38 = vadd.f32 %v780_v36, %v779_v37 }
 0x301   : > { %v3405_v43 = vpop.eup %3404 }
 0x302   : > { %v782_v40 = vpack.c.bf16 %v781_v38, %v781_v38  ;;  %v1154_v47 = vmul.f32 %v3405_v43, %v1151_v44 }
 0x304   : > { %3010 = vmatmul.mubr.msk.bf16.vlgmr.msra.gmra.mrb[0].mxu0 %vm756_vm0, %v782_v40  ;;  %3018 = vmatmul.mubr.msk.bf16.vlgmr.msra.gmra.mrb[0].mxu1 %vm756_vm0, %v782_v40  ;;  %v1156_v49 = vadd.f32 %v1154_v47, %v780_v36 }
 0x305   : > { %3022 = vmatpush3.bf16.msra.mxu0 %v3380_v39  ;;  %3025 = vmatprep.mubr.msk.bf16.mxu0 %vm3955_vm1, %v3954_v14 }
 0x306   : > { %3023 = vmatprep.subr.bf16.mxu0 %v3954_v14  ;;  %3033 = vmatprep.mubr.msk.bf16.mxu1 %vm3955_vm1, %v3954_v14  ;;  %v1157_v50 = vpack.c.bf16 %v1156_v49, %v1156_v49  ;;  %v3959_v49 = vmov 0  }
 0x307   : > { %3030 = vmatpush3.bf16.msra.mxu1 %v3384_v51 }
 0x308   : > { %3031 = vmatprep.subr.bf16.mxu1 %v3954_v14 }
 0x309   : > { %3024 = vmatpush3.bf16.msra.mxu0 %v3381_v41 }
 0x30a   : > { %3037 = vmatprep.subr.bf16.mxu0 %v3954_v14 }
 0x30b   : > { %3032 = vmatpush3.bf16.msra.mxu1 %v3385_v52 }
 0x30c   : > { %3026 = vmatmul.mubr.msk.bf16.vlgmr.msra.gmra.mrb[4].mxu0 %vm756_vm0, %v954_v45  ;;  %3045 = vmatprep.subr.bf16.mxu1 %v3954_v14 }
 0x30d   : > { %3038 = vmatpush3.bf16.msra.mxu0 %v3382_v46  ;;  %3041 = vmatprep.mubr.msk.bf16.mxu0 %vm3955_vm1, %v3954_v14 }
 0x30e   : > { %3039 = vmatprep.subr.bf16.mxu0 %v3954_v14  ;;  %3034 = vmatmul.mubr.msk.bf16.vlgmr.msra.gmra.mrb[4].mxu1 %vm756_vm0, %v954_v45 }
 0x30f   : > { %3047 = vmatprep.mubr.msk.bf16.mxu1 %vm3955_vm1, %v3954_v14 }
 0x311   : > { %3040 = vmatpush3.bf16.msra.mxu0 %v3383_v48  ;;  %v1127_v48 = vld [vmem:[%s4520_s26] sm:$0xf]  ;;  %s2938_s26 = sshll.u32 %s4998_s16, 7 }
 0x312   : > { %3051 = vmatprep.subr.bf16.mxu0 %v3954_v14  ;;  %vm1431_vm9 = vcmp.eq.bf16.partialorder %v1127_v48, 0 }
 0x314   : > { %3042 = vmatmul.mubr.msk.bf16.vlgmr.msra.gmra.mrb[8].mxu0 %vm756_vm0, %v1157_v50  ;;  %v1432_v50 = vsel %vm1431_vm9, 65537, %v3959_v49 }
 0x315   : > { %3053 = vmatprep.mubr.msk.bf16.mxu0 %vm3955_vm1, %v3954_v14  ;;  %v1433_v51 = vunpack.c.l.b16 %v1432_v50 }
 0x317   : > { %vm4654_vm10 = vcmp.ne.s32.totalorder %v1433_v51, 0 }
 0x3d7   : > { %v845_v55 = vpop.f32.mrb[0].mxu0  ;;  %v910_v56 = vpop.f32.mrb[0].mxu1 }
 0x3d8   : > { %v846_v57 = vadd.f32 %v2875_v53, %v845_v55  ;;  %v4605_v58 = vadd.f32 %v2879_v54, %v910_v56  ;;  %v3011_v59 = vpop.f32.mrb[1].mxu0  ;;  %v3019_v60 = vpop.f32.mrb[1].mxu1 }
 0x3d9   : > { %v848_v61 = vpop.f32.mrb[2].mxu0  ;;  %v913_v62 = vpop.f32.mrb[2].mxu1 }
 0x3da   : > { %v926_v63 = vpack.c.bf16 %v846_v57, %v846_v57  ;;  %v945_v1 = vpack.c.bf16 %v4605_v58, %v4605_v58  ;;  %v3020_v2 = vpop.f32.mrb[3].mxu1  ;;  %917 = vrot.lane.b32.xlu0 %v846_v57, %s3956_s6  ;;  %v3012_v3 = vpop.f32.mrb[3].mxu0  ;;  %920 = vrot.lane.b32.xlu1 %v846_v57, %s3957_s13 }
 0x3dc   : > { %931 = vst.msk [vmem:[#allocation2] sm:$0xf] %vm930_vm6, %v926_v63  ;;  %949 = vst.msk [vmem:[#allocation3] sm:$0xf] %vm930_vm6, %v945_v1 }
 0x3de   : > { %923 = vrot.lane.b32.xlu1 %v846_v57, %s3958_s15 }
 0x3df   : > { %v1017_v5 = vpop.f32.mrb[4].mxu0 }
 0x3e0   : > { %v4614_v6 = vadd.f32 %v2883_v4, %v1017_v5  ;;  %v3027_v7 = vpop.f32.mrb[5].mxu0 }
 0x3e1   : > { %v1020_v8 = vpop.f32.mrb[6].mxu0  ;;  %v1082_v22 = vpop.f32.mrb[4].mxu1 }
 0x3e2   : > { %v1098_v9 = vpack.c.bf16 %v4614_v6, %v4614_v6  ;;  %v3028_v10 = vpop.f32.mrb[7].mxu0  ;;  %v4627_v23 = vadd.f32 %v2887_v21, %v1082_v22  ;;  %v3035_v24 = vpop.f32.mrb[5].mxu1 }
 0x3e3   : > { %v1238_v11 = vld [vmem:[#allocation2] sm:$0xf]  ;;  %v1085_v25 = vpop.f32.mrb[6].mxu1  ;;  %v1489_v41 = vld [vmem:[#allocation3] sm:$0xf] }
 0x3e4   : > { %1102 = vst.msk [vmem:[#allocation4] sm:$0xf] %vm930_vm6, %v1098_v9  ;;  %v1247_v12 = vsel %vm1242_vm7, %v1238_v11, 0  ;;  %v1116_v26 = vpack.c.bf16 %v4627_v23, %v4627_v23  ;;  %v3036_v27 = vpop.f32.mrb[7].mxu1  ;;  %v1498_v45 = vsel %vm1496_vm8, %v1489_v41, 0 }
 0x3e5   : > { %3046 = vmatpush3.bf16.xpose.msra.mxu1 %v1247_v12 }
 0x3e6   : > { %3057 = vmatprep.subr.bf16.mxu1 %v3954_v14  ;;  %1120 = vst.msk [vmem:[#allocation5] sm:$0xf] %vm930_vm6, %v1116_v26 }
 0x3e7   : > { %v1218_v15 = vpop.f32.mrb[8].mxu0 }
 0x3e8   : > { %v1219_v16 = vadd.f32 %v2891_v13, %v1218_v15  ;;  %v3043_v17 = vpop.f32.mrb[9].mxu0 }
 0x3e9   : > { %v1221_v18 = vpop.f32.mrb[10].mxu0 }
 0x3ea   : > { %v1234_v19 = vpack.c.bf16 %v1219_v16, %v1219_v16  ;;  %1228 = vrot.lane.b32.xlu0 %v1219_v16, %s3957_s13  ;;  %1225 = vrot.lane.b32.xlu1 %v1219_v16, %s3956_s6  ;;  %v3044_v20 = vpop.f32.mrb[11].mxu0 }
 0x3ec   : > { %3048 = vmatmul.mubr.msk.bf16.vlgmr.msra.gmra.mrb[8].mxu1 %vm1242_vm7, %v1234_v19 }
 0x3ed   : > { %3059 = vmatprep.mubr.msk.bf16.mxu1 %vm3955_vm1, %v3954_v14 }
 0x3ee   : > { %1231 = vrot.lane.b32.xlu1 %v1219_v16, %s3958_s15 }
 0x44c   : > { %v921_v28 = vpop.permute.xlu1 %920  ;;  %v918_v29 = vpop.permute.xlu0 %917 }
 0x44d   : > { %v928_v30 = vpack.c.bf16 %v921_v28, %v921_v28  ;;  %v927_v31 = vpack.c.bf16 %v918_v29, %v918_v29 }
 0x44f   : > { %933 = vst.msk [vmem:[#allocation2 + $0x8] sm:$0xf] %vm930_vm6, %v928_v30  ;;  %932 = vst.msk [vmem:[#allocation2 + $0x4] sm:$0xf] %vm930_vm6, %v927_v31 }
 0x450   : > { %v924_v32 = vpop.permute.xlu1 %923 }
 0x451   : > { %v929_v33 = vpack.c.bf16 %v924_v32, %v924_v32 }
 0x453   : > { %934 = vst.msk [vmem:[#allocation2 + $0xc] sm:$0xf] %vm930_vm6, %v929_v33 }
 0x456   : > { %v1239_v34 = vld [vmem:[#allocation2 + $0x4] sm:$0xf]  ;;  %v1240_v35 = vld [vmem:[#allocation2 + $0x8] sm:$0xf] }
 0x457   : > { %v1293_v36 = vsel %vm1242_vm7, %v1239_v34, 0  ;;  %v1339_v37 = vsel %vm1242_vm7, %v1240_v35, 0 }
 0x458   : > { %3052 = vmatpush3.bf16.xpose.msra.mxu0 %v1293_v36  ;;  %3058 = vmatpush3.bf16.xpose.msra.mxu1 %v1339_v37 }
 0x459   : > { %3063 = vmatprep.subr.bf16.mxu0 %v3954_v14  ;;  %3069 = vmatprep.subr.bf16.mxu1 %v3954_v14 }
 0x45a   : > { %v1241_v40 = vld [vmem:[#allocation2 + $0xc] sm:$0xf] }
 0x45b   : > { %v1385_v44 = vsel %vm1242_vm7, %v1241_v40, 0 }
 0x45c   : > { %v1226_v38 = vpop.permute.xlu1 %1225  ;;  %v1229_v39 = vpop.permute.xlu0 %1228 }
 0x45d   : > { %v1235_v42 = vpack.c.bf16 %v1226_v38, %v1226_v38  ;;  %v1236_v43 = vpack.c.bf16 %v1229_v39, %v1229_v39 }
 0x45f   : > { %3054 = vmatmul.mubr.msk.bf16.vlgmr.msra.gmra.mrb[12].mxu0 %vm1242_vm7, %v1235_v42  ;;  %3060 = vmatmul.mubr.msk.bf16.vlgmr.msra.gmra.mrb[12].mxu1 %vm1242_vm7, %v1236_v43 }
 0x460   : > { %3064 = vmatpush3.bf16.xpose.msra.mxu0 %v1385_v44  ;;  %3070 = vmatpush3.bf16.msra.mxu1 %v1498_v45  ;;  %v1232_v46 = vpop.permute.xlu1 %1231 }
 0x461   : > { %3065 = vmatprep.mubr.msk.bf16.mxu0 %vm3955_vm1, %v3954_v14  ;;  %3071 = vmatprep.mubr.msk.bf16.mxu1 %vm3955_vm1, %v3954_v14  ;;  %v1237_v47 = vpack.c.bf16 %v1232_v46, %v1232_v46 }
 0x462   : > { %3075 = vmatprep.subr.bf16.mxu0 %v3954_v14  ;;  %3081 = vmatprep.subr.bf16.mxu1 %v3954_v14 }
 0x467   : > { %3066 = vmatmul.mubr.msk.bf16.vlgmr.msra.gmra.mrb[16].mxu0 %vm1242_vm7, %v1237_v47 }
 0x468   : > { %3077 = vmatprep.mubr.msk.bf16.mxu0 %vm3955_vm1, %v3954_v14 }
 0x4bf   : > { %v1283_v52 = vpop.f32.mrb[8].mxu1 }
 0x4c0   : > { %v1427_v54 = vmul.f32 0.35355338, %v1283_v52  ;;  %v3049_v55 = vpop.f32.mrb[9].mxu1 }
 0x4c1   : > { %v1286_v56 = vpop.f32.mrb[10].mxu1 }
 0x4c2   : > { %v3050_v57 = vpop.f32.mrb[11].mxu1  ;;  %v1437_v59 = vsel %vm4654_vm10, -1e+09, %v1427_v54 }
 0x4c3   : > { %v1441_v60 = vsel %vm1242_vm7, %v1437_v59, -inf }
 0x4c4   : > { %1442 = vmax.xlane.f32.xlu0 %v1441_v60 }
 0x532   : > { %v1329_v61 = vpop.f32.mrb[12].mxu0  ;;  %v1375_v62 = vpop.f32.mrb[12].mxu1 }
 0x533   : > { %v1428_v63 = vmul.f32 0.35355338, %v1329_v61  ;;  %v1429_v1 = vmul.f32 0.35355338, %v1375_v62  ;;  %v3055_v2 = vpop.f32.mrb[13].mxu0  ;;  %v3061_v3 = vpop.f32.mrb[13].mxu1 }
 0x534   : > { %v1332_v4 = vpop.f32.mrb[14].mxu0  ;;  %v1378_v5 = vpop.f32.mrb[14].mxu1 }
 0x535   : > { %v3056_v7 = vpop.f32.mrb[15].mxu0  ;;  %v3062_v8 = vpop.f32.mrb[15].mxu1  ;;  %v1438_v9 = vsel %vm4654_vm10, -1e+09, %v1428_v63  ;;  %v1439_v10 = vsel %vm4654_vm10, -1e+09, %v1429_v1 }
 0x536   : > { %v1444_v11 = vsel %vm1242_vm7, %v1438_v9, -inf  ;;  %v1447_v12 = vsel %vm1242_vm7, %v1439_v10, -inf }
 0x537   : > { %1445 = vmax.xlane.f32.xlu1 %v1444_v11  ;;  %1448 = vmax.xlane.f32.xlu0 %v1447_v12 }
 0x53a   : > { %v1421_v13 = vpop.f32.mrb[16].mxu0 }
 0x53b   : > { %v1430_v15 = vmul.f32 0.35355338, %v1421_v13  ;;  %v3067_v16 = vpop.f32.mrb[17].mxu0  ;;  %v3386_v13 = vld [vmem:[#allocation15 + $0x30] sm:$0xff]  }
 0x53c   : > { %v1424_v17 = vpop.f32.mrb[18].mxu0 }
 0x53d   : > { %v3068_v18 = vpop.f32.mrb[19].mxu0  ;;  %v1440_v19 = vsel %vm4654_vm10, -1e+09, %v1430_v15  ;;  %v3387_v15 = vld [vmem:[#allocation15 + $0x38] sm:$0xff]  }
 0x53e   : > { %v1450_v20 = vsel %vm1242_vm7, %v1440_v19, -inf }
 0x53f   : > { %1451 = vmax.xlane.f32.xlu0 %v1450_v20 }
 0x551   : > { %v1443_v21 = vpop.xlane.xlu0 %1442 }
 0x552   : > { %v1453_v22 = vsub.f32 %v1437_v59, %v1443_v21 }
 0x554   : > { %v1457_v24 = vmul.f32 1.442695, %v1453_v22 }
 0x556   : > { %3406 = vpow2.f32 %v1457_v24 }
 0x560   : > { %v3407_v25 = vpop.eup %3406 }
 0x561   : > { %v1465_v26 = vsel %vm1242_vm7, %v3407_v25, 0.0 }
 0x562   : > { %1466 = vadd.xlane.f32.xlu0 %v1465_v26 }
 0x5c4   : > { %v1446_v27 = vpop.xlane.xlu1 %1445  ;;  %v1449_v28 = vpop.xlane.xlu0 %1448 }
 0x5c5   : > { %v1454_v29 = vsub.f32 %v1438_v9, %v1446_v27  ;;  %v1455_v30 = vsub.f32 %v1439_v10, %v1449_v28 }
 0x5c7   : > { %v1459_v31 = vmul.f32 1.442695, %v1454_v29  ;;  %v1461_v32 = vmul.f32 1.442695, %v1455_v30 }
 0x5c9   : > { %3408 = vpow2.f32 %v1459_v31 }
 0x5ca   : > { %3410 = vpow2.f32 %v1461_v32 }
 0x5cc   : > { %v1452_v37 = vpop.xlane.xlu0 %1451 }
 0x5cd   : > { %v1456_v39 = vsub.f32 %v1440_v19, %v1452_v37 }
 0x5cf   : > { %v1463_v40 = vmul.f32 1.442695, %v1456_v39 }
 0x5d3   : > { %v3409_v33 = vpop.eup %3408 }
 0x5d4   : > { %v3411_v34 = vpop.eup %3410  ;;  %v1468_v35 = vsel %vm1242_vm7, %v3409_v33, 0.0 }
 0x5d5   : > { %1469 = vadd.xlane.f32.xlu1 %v1468_v35  ;;  %v1471_v36 = vsel %vm1242_vm7, %v3411_v34, 0.0  ;;  %v1872_v35 = vld [vmem:[#allocation4] sm:$0xf] }
 0x5d6   : > { %1472 = vadd.xlane.f32.xlu0 %v1471_v36  ;;  %v1880_v37 = vsel %vm1242_vm7, %v1872_v35, 0 }
 0x5e6   : > { %939 = vrot.lane.b32.xlu1 %v4605_v58, %s3957_s13 }
 0x5ec   : > { %936 = vrot.lane.b32.xlu0 %v4605_v58, %s3956_s6 }
 0x5ef   : > { %v1467_v38 = vpop.xlane.xlu0 %1466 }
 0x5f0   : > { %3412 = vrcp.f32 %v1467_v38  ;;  %v2903_v38 = vld [vmem:[#allocation16 + $0x3] ss:$0 sm:$0xff] }
 0x5f1   : > { %3414 = vpow2.f32 %v1463_v40 }
 0x5fa   : > { %v3413_v41 = vpop.eup %3412 }
 0x5fb   : > { %v1481_v42 = vmul.f32 %v3413_v41, %v3407_v25  ;;  %v3415_v44 = vpop.eup %3414 }
 0x5fc   : > { %v1474_v45 = vsel %vm1242_vm7, %v3415_v44, 0.0 }
 0x5fd   : > { %v1485_v43 = vpack.c.bf16 %v1481_v42, %v1481_v42 }
 0x5ff   : > { %3072 = vmatmul.mubr.msk.bf16.vlgmr.msra.gmra.mrb[16].mxu1 %vm1242_vm7, %v1485_v43 }
 0x600   : > { %3083 = vmatprep.mubr.msk.bf16.mxu1 %vm3955_vm1, %v3954_v14 }
 0x60a   : > { %1475 = vadd.xlane.f32.xlu1 %v1474_v45 }
 0x61b   : > { %942 = vrot.lane.b32.xlu1 %v4605_v58, %s3958_s15 }
 0x662   : > { %v1470_v46 = vpop.xlane.xlu1 %1469 }
 0x663   : > { %3416 = vrcp.f32 %v1470_v46  ;;  %v1473_v47 = vpop.xlane.xlu0 %1472 }
 0x664   : > { %3418 = vrcp.f32 %v1473_v47 }
 0x666   : > { %v940_v48 = vpop.permute.xlu1 %939 }
 0x667   : > { %v947_v50 = vpack.c.bf16 %v940_v48, %v940_v48  ;;  %v937_v51 = vpop.permute.xlu0 %936 }
 0x668   : > { %v946_v52 = vpack.c.bf16 %v937_v51, %v937_v51 }
 0x669   : > { %951 = vst.msk [vmem:[#allocation3 + $0x8] sm:$0xf] %vm930_vm6, %v947_v50 }
 0x66a   : > { %950 = vst.msk [vmem:[#allocation3 + $0x4] sm:$0xf] %vm930_vm6, %v946_v52 }
 0x66d   : > { %v3417_v53 = vpop.eup %3416 }
 0x66e   : > { %v3419_v54 = vpop.eup %3418  ;;  %v1482_v56 = vmul.f32 %v3417_v53, %v3409_v33 }
 0x66f   : > { %v1483_v55 = vmul.f32 %v3419_v54, %v3411_v34 }
 0x670   : > { %v1491_v57 = vld [vmem:[#allocation3 + $0x8] sm:$0xf]  ;;  %v1486_v62 = vpack.c.bf16 %v1482_v56, %v1482_v56  ;;  %v3389_v56 = vld [vmem:[#allocation18 + $0x8] sm:$0xff]  }
 0x671   : > { %v1490_v59 = vld [vmem:[#allocation3 + $0x4] sm:$0xf]  ;;  %v1590_v58 = vsel %vm1496_vm8, %v1491_v57, 0  ;;  %v1487_v61 = vpack.c.bf16 %v1483_v55, %v1483_v55 }
 0x672   : > { %v1544_v60 = vsel %vm1496_vm8, %v1490_v59, 0  ;;  %3082 = vmatpush3.bf16.msra.mxu1 %v1590_v58  ;;  %v3388_v55 = vld [vmem:[#allocation18] sm:$0xff]  }
 0x673   : > { %3076 = vmatpush3.bf16.msra.mxu0 %v1544_v60  ;;  %3093 = vmatprep.subr.bf16.mxu1 %v3954_v14 }
 0x674   : > { %3087 = vmatprep.subr.bf16.mxu0 %v3954_v14 }
 0x675   : > { %3084 = vmatmul.mubr.msk.bf16.vlgmr.msra.gmra.mrb[20].mxu1 %vm1242_vm7, %v1487_v61 }
 0x676   : > { %3078 = vmatmul.mubr.msk.bf16.vlgmr.msra.gmra.mrb[20].mxu0 %vm1242_vm7, %v1486_v62  ;;  %3097 = vmatprep.mubr.msk.bf16.mxu1 %vm3955_vm1, %v3954_v14 }
 0x677   : > { %3089 = vmatprep.mubr.msk.bf16.mxu0 %vm3955_vm1, %v3954_v14  ;;  %3094 = vmatpush3.bf16.msra.mxu1 %v3386_v13  ;;  %v2909_v13 = vld [vmem:[#allocation19] ss:$0 sm:$0xff] }
 0x678   : > { %3095 = vmatprep.subr.bf16.mxu1 %v3954_v14 }
 0x67b   : > { %3096 = vmatpush3.bf16.msra.mxu1 %v3387_v15 }
 0x67c   : > { %3109 = vmatprep.subr.bf16.mxu1 %v3954_v14 }
 0x697   : > { %v1476_v63 = vpop.xlane.xlu1 %1475 }
 0x698   : > { %3420 = vrcp.f32 %v1476_v63 }
 0x69b   : > { %v943_v1 = vpop.permute.xlu1 %942 }
 0x69c   : > { %v948_v2 = vpack.c.bf16 %v943_v1, %v943_v1 }
 0x69e   : > { %952 = vst.msk [vmem:[#allocation3 + $0xc] sm:$0xf] %vm930_vm6, %v948_v2 }
 0x6a2   : > { %v3421_v3 = vpop.eup %3420 }
 0x6a3   : > { %v1484_v4 = vmul.f32 %v3421_v3, %v3415_v44  ;;  %v1784_v3 = vstv %s2907_s0 }
 0x6a5   : > { %v1492_v5 = vld [vmem:[#allocation3 + $0xc] sm:$0xf]  ;;  %v1488_v8 = vpack.c.bf16 %v1484_v4, %v1484_v4 }
 0x6a6   : > { %v1636_v7 = vsel %vm1496_vm8, %v1492_v5, 0 }
 0x6a7   : > { %3088 = vmatpush3.bf16.msra.mxu0 %v1636_v7  ;;  %v1789_v7 = vstv %s2908_s28 }
 0x6a8   : > { %3101 = vmatprep.subr.bf16.mxu0 %v3954_v14 }
 0x6aa   : > { %3090 = vmatmul.mubr.msk.bf16.vlgmr.msra.gmra.mrb[24].mxu0 %vm1242_vm7, %v1488_v8 }
 0x6ab   : > { %3105 = vmatprep.mubr.msk.bf16.mxu0 %vm3955_vm1, %v3954_v14  ;;  %3102 = vmatpush3.bf16.msra.mxu0 %v3388_v55 }
 0x6ac   : > { %3103 = vmatprep.subr.bf16.mxu0 %v3954_v14 }
 0x6af   : > { %3104 = vmatpush3.bf16.msra.mxu0 %v3389_v56 }
 0x6b0   : > { %3115 = vmatprep.subr.bf16.mxu0 %v3954_v14 }
 0x6d2   : > { %v1534_v9 = vpop.f32.mrb[16].mxu1 }
 0x6d3   : > { %v3073_v10 = vpop.f32.mrb[17].mxu1 }
 0x6d4   : > { %v1537_v11 = vpop.f32.mrb[18].mxu1 }
 0x6d5   : > { %v3074_v12 = vpop.f32.mrb[19].mxu1 }
 0x748   : > { %v1626_v16 = vpop.f32.mrb[20].mxu1 }
 0x749   : > { %v1580_v17 = vpop.f32.mrb[20].mxu0  ;;  %1683 = vrot.lane.b32.xlu0 %v1626_v16, %s3960_s23  ;;  %v3085_v18 = vpop.f32.mrb[21].mxu1 }
 0x74a   : > { %1679 = vrot.lane.b32.xlu1 %v1580_v17, %s3961_s7  ;;  %v3079_v19 = vpop.f32.mrb[21].mxu0  ;;  %v1629_v20 = vpop.f32.mrb[22].mxu1 }
 0x74b   : > { %v1583_v21 = vpop.f32.mrb[22].mxu0  ;;  %v3086_v22 = vpop.f32.mrb[23].mxu1 }
 0x74c   : > { %v3080_v24 = vpop.f32.mrb[23].mxu0 }
 0x77d   : > { %v1672_v25 = vpop.f32.mrb[24].mxu0 }
 0x77e   : > { %1687 = vrot.lane.b32.xlu1 %v1672_v25, %s3962_s27  ;;  %v3091_v26 = vpop.f32.mrb[25].mxu0 }
 0x77f   : > { %v1675_v27 = vpop.f32.mrb[26].mxu0 }
 0x780   : > { %v3092_v28 = vpop.f32.mrb[27].mxu0  ;;  %v2122_v27 = vld [vmem:[#allocation5] sm:$0xf] }
 0x7bb   : > { %v1684_v31 = vpop.permute.xlu0 %1683 }
 0x7bc   : > { %v1680_v29 = vpop.permute.xlu1 %1679 }
 0x7bd   : > { %v1690_v30 = vsel %vm1242_vm7, %v1534_v9, %v1680_v29 }
 0x7be   : > { %v1692_v32 = vsel %vm1691_vm11, %v1690_v30, %v1684_v31  ;;  %v2130_v31 = vsel %vm1496_vm8, %v2122_v27, 0 }
 0x7f0   : > { %v1688_v33 = vpop.permute.xlu1 %1687 }
 0x7f1   : > { %v1694_v34 = vsel %vm1693_vm12, %v1692_v32, %v1688_v33 }
 0x7f2   : > { %v1695_v36 = vpack.c.bf16 %v1694_v34, %v1694_v34  ;;  %v1128_v34 = vld [vmem:[%s4522_s25] sm:$0xf]  ;;  %s2590_s25 = sshll.u32 %s745_s3, 4  ;;  %s4838_s25 = int_to_ptr.vmem [resolvable:$true] %s2590_s25 }
 0x7f3   : > { %vm2064_vm15 = vcmp.eq.bf16.partialorder %v1128_v34, 0 }
 0x7f4   : > { %3098 = vmatmul.mubr.msk.bf16.vlgmr.msra.gmra.mrb[24].mxu1 %vm756_vm0, %v1695_v36  ;;  %v2065_v35 = vsel %vm2064_vm15, 65537, %v3959_v49 }
 0x7f5   : > { %3110 = vmatpush3.bf16.xpose.msra.mxu1 %v1880_v37  ;;  %3111 = vmatprep.mubr.msk.bf16.mxu1 %vm3955_vm1, %v3954_v14  ;;  %v2066_v36 = vunpack.c.l.b16 %v2065_v35 }
 0x7f6   : > { %3121 = vmatprep.subr.bf16.mxu1 %v3954_v14 }
 0x7f7   : > { %vm4760_vm2 = vcmp.ne.s32.totalorder %v2066_v36, 0 }
 0x8c7   : > { %v1758_v39 = vpop.f32.mrb[24].mxu1 }
 0x8c8   : > { %v1759_v40 = vadd.f32 %v2903_v38, %v1758_v39  ;;  %v3099_v41 = vpop.f32.mrb[25].mxu1 }
 0x8c9   : > { %v1761_v42 = vpop.f32.mrb[26].mxu1 }
 0x8ca   : > { %v4715_v43 = vadd.f32 %v1759_v40, %v4556_v0  ;;  %v3100_v44 = vpop.f32.mrb[27].mxu1 }
 0x8cc   : > { %v1767_v45 = vsel %vm756_vm0, %v4715_v43, 0.0 }
 0x8cd   : > { %1768 = vadd.xlane.f32.xlu0 %v1767_v45 }
 0x8e3   : > { %1089 = vrot.lane.b32.xlu0 %v4614_v6, %s3956_s6 }
 0x8e7   : > { %1095 = vrot.lane.b32.xlu0 %v4614_v6, %s3958_s15 }
 0x95a   : > { %v1769_v46 = vpop.xlane.xlu0 %1768 }
 0x95b   : > { %v1770_v47 = vmul.f32 0.03125, %v1769_v46 }
 0x95d   : > { %v1771_v48 = vsub.f32 %v4715_v43, %v1770_v47 }
 0x95e   : > { %v1090_v50 = vpop.permute.xlu0 %1089 }
 0x95f   : > { %v1099_v51 = vpack.c.bf16 %v1090_v50, %v1090_v50  ;;  %v1772_v52 = vmul.f32 %v1771_v48, %v1771_v48  ;;  %v1785_v4 = vmul.f32 %v1784_v3, %v1771_v48 }
 0x961   : > { %1103 = vst.msk [vmem:[#allocation4 + $0x4] sm:$0xf] %vm930_vm6, %v1099_v51  ;;  %v1773_v0 = vsel %vm756_vm0, %v1772_v52, 0.0 }
 0x962   : > { %1774 = vadd.xlane.f32.xlu1 %v1773_v0  ;;  %v1096_v53 = vpop.permute.xlu0 %1095 }
 0x963   : > { %v1101_v54 = vpack.c.bf16 %v1096_v53, %v1096_v53 }
 0x965   : > { %1105 = vst.msk [vmem:[#allocation4 + $0xc] sm:$0xf] %vm930_vm6, %v1101_v54 }
 0x968   : > { %v1873_v10 = vld [vmem:[#allocation4 + $0x4] sm:$0xf] }
 0x969   : > { %v1926_v12 = vsel %vm1242_vm7, %v1873_v10, 0 }
 0x96c   : > { %v1875_v26 = vld [vmem:[#allocation4 + $0xc] sm:$0xf] }
 0x96d   : > { %v2018_v30 = vsel %vm1242_vm7, %v1875_v26, 0 }
 0x973   : > { %1092 = vrot.lane.b32.xlu1 %v4614_v6, %s3957_s13 }
 0x9ef   : > { %v1775_v57 = vpop.xlane.xlu1 %1774 }
 0x9f0   : > { %v1776_v59 = vmul.f32 0.032258064, %v1775_v57 }
 0x9f2   : > { %3422 = vrsqrt.f32 %v1776_v59  ;;  %vm1779_vm13 = vcmp.eq.f32.partialorder %v1776_v59, inf  ;;  %v1782_v63 = vand.u32 2147483648, %v1776_v59  ;;  %vm1781_vm14 = vcmp.eq.f32.partialorder %v1776_v59, 0.0 }
 0x9f3   : > { %v1093_v58 = vpop.permute.xlu1 %1092 }
 0x9f4   : > { %v1100_v60 = vpack.c.bf16 %v1093_v58, %v1093_v58 }
 0x9f6   : > { %1104 = vst.msk [vmem:[#allocation4 + $0x8] sm:$0xf] %vm930_vm6, %v1100_v60 }
 0x9fc   : > { %v3423_v61 = vpop.eup %3422 }
 0x9fd   : > { %v1778_v62 = vmul.f32 %v3423_v61, %v1776_v59  ;;  %v1874_v19 = vld [vmem:[#allocation4 + $0x8] sm:$0xf] }
 0x9fe   : > { %v1972_v22 = vsel %vm1242_vm7, %v1874_v19, 0 }
 0x9ff   : > { %v1780_v6 = vsel %vm1779_vm13, %v1776_v59, %v1778_v62 }
 0xa00   : > { %v1783_v1 = vsel %vm1781_vm14, %v1782_v63, %v1780_v6 }
 0xa01   : > { %v1786_v2 = vadd.f32 1e-06, %v1783_v1 }
 0xa03   : > { %3424 = vrcp.f32 %v1786_v2 }
 0xa0d   : > { %v3425_v5 = vpop.eup %3424 }
 0xa0e   : > { %v1788_v8 = vmul.f32 %v3425_v5, %v1785_v4 }
 0xa10   : > { %v1790_v9 = vadd.f32 %v1789_v7, %v1788_v8 }
 0xa12   : > { %v1791_v11 = vpack.c.bf16 %v1790_v9, %v1790_v9 }
 0xa14   : > { %3106 = vmatmul.mubr.msk.bf16.vlgmr.msra.gmra.mrb[28].mxu0 %vm756_vm0, %v1791_v11 }
 0xa15   : > { %3116 = vmatpush3.bf16.xpose.msra.mxu0 %v1926_v12  ;;  %3117 = vmatprep.mubr.msk.bf16.mxu0 %vm3955_vm1, %v3954_v14 }
 0xa16   : > { %3127 = vmatprep.subr.bf16.mxu0 %v3954_v14 }
 0xae7   : > { %v1852_v15 = vpop.f32.mrb[28].mxu0 }
 0xae8   : > { %v1853_v16 = vadd.f32 %v2909_v13, %v1852_v15  ;;  %v3107_v17 = vpop.f32.mrb[29].mxu0 }
 0xae9   : > { %v1855_v18 = vpop.f32.mrb[30].mxu0 }
 0xaea   : > { %v1868_v20 = vpack.c.bf16 %v1853_v16, %v1853_v16  ;;  %1862 = vrot.lane.b32.xlu0 %v1853_v16, %s3957_s13  ;;  %1859 = vrot.lane.b32.xlu1 %v1853_v16, %s3956_s6  ;;  %v3108_v21 = vpop.f32.mrb[31].mxu0 }
 0xaec   : > { %3112 = vmatmul.mubr.msk.bf16.vlgmr.msra.gmra.mrb[28].mxu1 %vm1242_vm7, %v1868_v20 }
 0xaed   : > { %3122 = vmatpush3.bf16.xpose.msra.mxu1 %v1972_v22  ;;  %3123 = vmatprep.mubr.msk.bf16.mxu1 %vm3955_vm1, %v3954_v14 }
 0xaee   : > { %1865 = vrot.lane.b32.xlu1 %v1853_v16, %s3958_s15  ;;  %3133 = vmatprep.subr.bf16.mxu1 %v3954_v14 }
 0xb5c   : > { %v1860_v24 = vpop.permute.xlu1 %1859  ;;  %v1863_v25 = vpop.permute.xlu0 %1862 }
 0xb5d   : > { %v1869_v28 = vpack.c.bf16 %v1860_v24, %v1860_v24  ;;  %v1870_v29 = vpack.c.bf16 %v1863_v25, %v1863_v25 }
 0xb5f   : > { %3118 = vmatmul.mubr.msk.bf16.vlgmr.msra.gmra.mrb[32].mxu0 %vm1242_vm7, %v1869_v28  ;;  %3124 = vmatmul.mubr.msk.bf16.vlgmr.msra.gmra.mrb[32].mxu1 %vm1242_vm7, %v1870_v29 }
 0xb60   : > { %3128 = vmatpush3.bf16.xpose.msra.mxu0 %v2018_v30  ;;  %3134 = vmatpush3.bf16.msra.mxu1 %v2130_v31  ;;  %v1866_v32 = vpop.permute.xlu1 %1865 }
 0xb61   : > { %3129 = vmatprep.mubr.msk.bf16.mxu0 %vm3955_vm1, %v3954_v14  ;;  %3135 = vmatprep.mubr.msk.bf16.mxu1 %vm3955_vm1, %v3954_v14  ;;  %v1871_v33 = vpack.c.bf16 %v1866_v32, %v1866_v32 }
 0xb62   : > { %3139 = vmatprep.subr.bf16.mxu0 %v3954_v14  ;;  %3145 = vmatprep.subr.bf16.mxu1 %v3954_v14 }
 0xb67   : > { %3130 = vmatmul.mubr.msk.bf16.vlgmr.msra.gmra.mrb[36].mxu0 %vm1242_vm7, %v1871_v33 }
 0xb68   : > { %3141 = vmatprep.mubr.msk.bf16.mxu0 %vm3955_vm1, %v3954_v14 }
 0xbbf   : > { %v1916_v37 = vpop.f32.mrb[28].mxu1 }
 0xbc0   : > { %v2060_v39 = vmul.f32 0.35355338, %v1916_v37  ;;  %v3113_v40 = vpop.f32.mrb[29].mxu1 }
 0xbc1   : > { %v1919_v41 = vpop.f32.mrb[30].mxu1 }
 0xbc2   : > { %v3114_v42 = vpop.f32.mrb[31].mxu1  ;;  %v2070_v44 = vsel %vm4760_vm2, -1e+09, %v2060_v39 }
 0xbc3   : > { %v2074_v45 = vsel %vm1242_vm7, %v2070_v44, -inf }
 0xbc4   : > { %2075 = vmax.xlane.f32.xlu0 %v2074_v45 }
 0xc32   : > { %v1962_v46 = vpop.f32.mrb[32].mxu0  ;;  %v2008_v47 = vpop.f32.mrb[32].mxu1 }
 0xc33   : > { %v2061_v48 = vmul.f32 0.35355338, %v1962_v46  ;;  %v2062_v49 = vmul.f32 0.35355338, %v2008_v47  ;;  %v3119_v50 = vpop.f32.mrb[33].mxu0  ;;  %v3125_v51 = vpop.f32.mrb[33].mxu1 }
 0xc34   : > { %v1965_v52 = vpop.f32.mrb[34].mxu0  ;;  %v2011_v0 = vpop.f32.mrb[34].mxu1 }
 0xc35   : > { %v3120_v53 = vpop.f32.mrb[35].mxu0  ;;  %v3126_v54 = vpop.f32.mrb[35].mxu1  ;;  %v2071_v55 = vsel %vm4760_vm2, -1e+09, %v2061_v48  ;;  %v2072_v56 = vsel %vm4760_vm2, -1e+09, %v2062_v49 }
 0xc36   : > { %v2077_v57 = vsel %vm1242_vm7, %v2071_v55, -inf  ;;  %v2080_v59 = vsel %vm1242_vm7, %v2072_v56, -inf }
 0xc37   : > { %2078 = vmax.xlane.f32.xlu1 %v2077_v57  ;;  %2081 = vmax.xlane.f32.xlu0 %v2080_v59 }
 0xc3a   : > { %v2054_v58 = vpop.f32.mrb[36].mxu0 }
 0xc3b   : > { %v2063_v60 = vmul.f32 0.35355338, %v2054_v58  ;;  %v3131_v61 = vpop.f32.mrb[37].mxu0 }
 0xc3c   : > { %v2057_v62 = vpop.f32.mrb[38].mxu0 }
 0xc3d   : > { %v3132_v63 = vpop.f32.mrb[39].mxu0  ;;  %v2073_v6 = vsel %vm4760_vm2, -1e+09, %v2063_v60 }
 0xc3e   : > { %v2083_v1 = vsel %vm1242_vm7, %v2073_v6, -inf }
 0xc3f   : > { %2084 = vmax.xlane.f32.xlu0 %v2083_v1  ;;  %v3391_v1 = vld [vmem:[#allocation18 + $0x38] sm:$0xff]  }
 0xc51   : > { %v2076_v2 = vpop.xlane.xlu0 %2075 }
 0xc52   : > { %v2086_v3 = vsub.f32 %v2070_v44, %v2076_v2 }
 0xc54   : > { %v2090_v4 = vmul.f32 1.442695, %v2086_v3 }
 0xc56   : > { %3426 = vpow2.f32 %v2090_v4 }
 0xc60   : > { %v3427_v5 = vpop.eup %3426 }
 0xc61   : > { %v2098_v7 = vsel %vm1242_vm7, %v3427_v5, 0.0 }
 0xc62   : > { %2099 = vadd.xlane.f32.xlu0 %v2098_v7 }
 0xcc4   : > { %v2079_v8 = vpop.xlane.xlu1 %2078  ;;  %v2082_v9 = vpop.xlane.xlu0 %2081 }
 0xcc5   : > { %v2087_v10 = vsub.f32 %v2071_v55, %v2079_v8  ;;  %v2088_v11 = vsub.f32 %v2072_v56, %v2082_v9  ;;  %v3390_v56 = vld [vmem:[#allocation18 + $0x30] sm:$0xff]  }
 0xcc7   : > { %v2092_v12 = vmul.f32 1.442695, %v2087_v10  ;;  %v2094_v13 = vmul.f32 1.442695, %v2088_v11 }
 0xcc9   : > { %3428 = vpow2.f32 %v2092_v12 }
 0xcca   : > { %3430 = vpow2.f32 %v2094_v13 }
 0xccc   : > { %v2085_v19 = vpop.xlane.xlu0 %2084 }
 0xccd   : > { %v2089_v21 = vsub.f32 %v2073_v6, %v2085_v19 }
 0xccf   : > { %v2096_v22 = vmul.f32 1.442695, %v2089_v21 }
 0xcd3   : > { %v3429_v15 = vpop.eup %3428 }
 0xcd4   : > { %v3431_v16 = vpop.eup %3430  ;;  %v2101_v17 = vsel %vm1242_vm7, %v3429_v15, 0.0 }
 0xcd5   : > { %2102 = vadd.xlane.f32.xlu1 %v2101_v17  ;;  %v2104_v18 = vsel %vm1242_vm7, %v3431_v16, 0.0 }
 0xcd6   : > { %2105 = vadd.xlane.f32.xlu0 %v2104_v18 }
 0xce6   : > { %1110 = vrot.lane.b32.xlu1 %v4627_v23, %s3957_s13 }
 0xcec   : > { %1107 = vrot.lane.b32.xlu0 %v4627_v23, %s3956_s6  ;;  %s4999_s6 = sld [smem:[#allocation58_spill]] }
 0xcef   : > { %v2100_v20 = vpop.xlane.xlu0 %2099 }
 0xcf0   : > { %3432 = vrcp.f32 %v2100_v20 }
 0xcf1   : > { %3434 = vpow2.f32 %v2096_v22 }
 0xcf2   : > { %s4836_s13 = scalar_lea.hbm %s4999_s6, %s2938_s26 }
 0xcfa   : > { %v3433_v24 = vpop.eup %3432 }
 0xcfb   : > { %v2114_v25 = vmul.f32 %v3433_v24, %v3427_v5  ;;  %v3435_v27 = vpop.eup %3434 }
 0xcfc   : > { %v2107_v28 = vsel %vm1242_vm7, %v3435_v27, 0.0 }
 0xcfd   : > { %v2118_v26 = vpack.c.bf16 %v2114_v25, %v2114_v25 }
 0xcff   : > { %3136 = vmatmul.mubr.msk.bf16.vlgmr.msra.gmra.mrb[36].mxu1 %vm1242_vm7, %v2118_v26 }
 0xd00   : > { %3147 = vmatprep.mubr.msk.bf16.mxu1 %vm3955_vm1, %v3954_v14 }
 0xd0a   : > { %2108 = vadd.xlane.f32.xlu1 %v2107_v28 }
 0xd1b   : > { %1113 = vrot.lane.b32.xlu1 %v4627_v23, %s3958_s15  ;;  %s3816_s15 = scalar_lea.vmem %s4838_s25, 128 }
 0xd1c   : > { %p3817_p5 = scmp.ne.s32.totalorder %s4838_s25, %s3816_s15 }
 0xd1e   : > { %p3818_p8 = pnand %p3817_p5, %p5000_p2 }
 0xd20   : > { %p3819_p4 = pneg %p3818_p8 }
 0xd62   : > { %v2103_v29 = vpop.xlane.xlu1 %2102 }
 0xd63   : > { %3436 = vrcp.f32 %v2103_v29  ;;  %v2106_v30 = vpop.xlane.xlu0 %2105  ;;  %v3392_v29 = vld [vmem:[#allocation21] sm:$0xff]  }
 0xd64   : > { %3438 = vrcp.f32 %v2106_v30  ;;  %v3393_v30 = vld [vmem:[#allocation21 + $0x8] sm:$0xff]  }
 0xd66   : > { %v1111_v31 = vpop.permute.xlu1 %1110 }
 0xd67   : > { %v1118_v32 = vpack.c.bf16 %v1111_v31, %v1111_v31  ;;  %v1108_v33 = vpop.permute.xlu0 %1107  ;;  %v3395_v31 = vld [vmem:[#allocation24 + $0x8] sm:$0xff]  }
 0xd68   : > { %v1117_v34 = vpack.c.bf16 %v1108_v33, %v1108_v33 }
 0xd69   : > { %1122 = vst.msk [vmem:[#allocation5 + $0x8] sm:$0xf] %vm930_vm6, %v1118_v32 }
 0xd6a   : > { %1121 = vst.msk [vmem:[#allocation5 + $0x4] sm:$0xf] %vm930_vm6, %v1117_v34 }
 0xd6d   : > { %v3437_v35 = vpop.eup %3436 }
 0xd6e   : > { %v3439_v36 = vpop.eup %3438  ;;  %v2115_v38 = vmul.f32 %v3437_v35, %v3429_v15  ;;  %v2921_v15 = vld [vmem:[#allocation19 + $0x3] ss:$0 sm:$0xff] }
 0xd6f   : > { %v2116_v37 = vmul.f32 %v3439_v36, %v3431_v16 }
 0xd70   : > { %v2124_v39 = vld [vmem:[#allocation5 + $0x8] sm:$0xf]  ;;  %v2119_v44 = vpack.c.bf16 %v2115_v38, %v2115_v38 }
 0xd71   : > { %v2123_v40 = vld [vmem:[#allocation5 + $0x4] sm:$0xf]  ;;  %v2222_v23 = vsel %vm1496_vm8, %v2124_v39, 0  ;;  %v2120_v42 = vpack.c.bf16 %v2116_v37, %v2116_v37 }
 0xd72   : > { %v2176_v41 = vsel %vm1496_vm8, %v2123_v40, 0  ;;  %3146 = vmatpush3.bf16.msra.mxu1 %v2222_v23  ;;  %v2414_v40 = vstv %s2925_s9 }
 0xd73   : > { %3140 = vmatpush3.bf16.msra.mxu0 %v2176_v41  ;;  %3157 = vmatprep.subr.bf16.mxu1 %v3954_v14 }
 0xd74   : > { %3151 = vmatprep.subr.bf16.mxu0 %v3954_v14 }
 0xd75   : > { %3148 = vmatmul.mubr.msk.bf16.vlgmr.msra.gmra.mrb[40].mxu1 %vm1242_vm7, %v2120_v42  ;;  %v2419_v42 = vstv %s2926_s2 }
 0xd76   : > { %3142 = vmatmul.mubr.msk.bf16.vlgmr.msra.gmra.mrb[40].mxu0 %vm1242_vm7, %v2119_v44  ;;  %3161 = vmatprep.mubr.msk.bf16.mxu1 %vm3955_vm1, %v3954_v14 }
 0xd77   : > { %3153 = vmatprep.mubr.msk.bf16.mxu0 %vm3955_vm1, %v3954_v14  ;;  %3158 = vmatpush3.bf16.msra.mxu1 %v3390_v56  ;;  %v2931_v56 = vld [vmem:[#allocation25] ss:$0 sm:$0xff] }
 0xd78   : > { %3159 = vmatprep.subr.bf16.mxu1 %v3954_v14 }
 0xd7b   : > { %3160 = vmatpush3.bf16.msra.mxu1 %v3391_v1 }
 0xd7c   : > { %3173 = vmatprep.subr.bf16.mxu1 %v3954_v14 }
 0xd97   : > { %v2109_v45 = vpop.xlane.xlu1 %2108 }
 0xd98   : > { %3440 = vrcp.f32 %v2109_v45 }
 0xd9b   : > { %v1114_v46 = vpop.permute.xlu1 %1113 }
 0xd9c   : > { %v1119_v47 = vpack.c.bf16 %v1114_v46, %v1114_v46 }
 0xd9e   : > { %1123 = vst.msk [vmem:[#allocation5 + $0xc] sm:$0xf] %vm930_vm6, %v1119_v47  ;;  %v3396_v47 = vld [vmem:[#allocation24 + $0x10] sm:$0xff]  }
 0xda2   : > { %v3441_v48 = vpop.eup %3440 }
 0xda3   : > { %v2117_v49 = vmul.f32 %v3441_v48, %v3435_v27  ;;  %v3397_v48 = vld [vmem:[#allocation24 + $0x18] sm:$0xff]  }
 0xda5   : > { %v2125_v50 = vld [vmem:[#allocation5 + $0xc] sm:$0xf]  ;;  %v2121_v52 = vpack.c.bf16 %v2117_v49, %v2117_v49  ;;  %v2927_v49 = vld [vmem:[#allocation22] ss:$0 sm:$0xff] }
 0xda6   : > { %v2268_v51 = vsel %vm1496_vm8, %v2125_v50, 0 }
 0xda7   : > { %3152 = vmatpush3.bf16.msra.mxu0 %v2268_v51 }
 0xda8   : > { %3165 = vmatprep.subr.bf16.mxu0 %v3954_v14 }
 0xdaa   : > { %3154 = vmatmul.mubr.msk.bf16.vlgmr.msra.gmra.mrb[44].mxu0 %vm1242_vm7, %v2121_v52 }
 0xdab   : > { %3169 = vmatprep.mubr.msk.bf16.mxu0 %vm3955_vm1, %v3954_v14  ;;  %3166 = vmatpush3.bf16.msra.mxu0 %v3392_v29 }
 0xdac   : > { %3167 = vmatprep.subr.bf16.mxu0 %v3954_v14 }
 0xdaf   : > { %3168 = vmatpush3.bf16.msra.mxu0 %v3393_v30 }
 0xdd2   : > { %v2166_v0 = vpop.f32.mrb[36].mxu1 }
 0xdd3   : > { %v3137_v53 = vpop.f32.mrb[37].mxu1 }
 0xdd4   : > { %v2169_v54 = vpop.f32.mrb[38].mxu1 }
 0xdd5   : > { %v3138_v55 = vpop.f32.mrb[39].mxu1 }
 0xe48   : > { %v2258_v57 = vpop.f32.mrb[40].mxu1 }
 0xe49   : > { %v2212_v59 = vpop.f32.mrb[40].mxu0  ;;  %2315 = vrot.lane.b32.xlu0 %v2258_v57, %s3960_s23  ;;  %v3149_v58 = vpop.f32.mrb[41].mxu1  ;;  %s3963_s23 = smov [#allocation30]  }
 0xe4a   : > { %2311 = vrot.lane.b32.xlu1 %v2212_v59, %s3961_s7  ;;  %v3143_v60 = vpop.f32.mrb[41].mxu0  ;;  %v2261_v61 = vpop.f32.mrb[42].mxu1  ;;  %s3820_s7 = sshll.u32 %s3963_s23, 4  ;;  %s3821_s7 = int_to_ptr.vmem [resolvable:$false] %s3820_s7 }
 0xe4b   : > { %v2215_v62 = vpop.f32.mrb[42].mxu0  ;;  %v3150_v63 = vpop.f32.mrb[43].mxu1  ;;  %p3823_p13 = scmp.lt.s32.totalorder %s4838_s25, %s3821_s7 }
 0xe4c   : > { %v3144_v6 = vpop.f32.mrb[43].mxu0 }
 0xe7d   : > { %v2304_v2 = vpop.f32.mrb[44].mxu0 }
 0xe7e   : > { %2319 = vrot.lane.b32.xlu1 %v2304_v2, %s3962_s27  ;;  %v3155_v3 = vpop.f32.mrb[45].mxu0  ;;  %s3822_s27 = scalar_lea.vmem %s3821_s7, 256 }
 0xe7f   : > { %v2307_v4 = vpop.f32.mrb[46].mxu0  ;;  %p3824_p1 = scmp.lt.s32.totalorder %s3822_s27, %s3816_s15 }
 0xe80   : > { %v3156_v5 = vpop.f32.mrb[47].mxu0 }
 0xe81   : > { %p3825_p9 = por %p3824_p1, %p3823_p13 }
 0xe83   : > { %p3826_p0 = pnand %p3825_p9, %p3819_p4 }
 0xebb   : > { %v2316_v9 = vpop.permute.xlu0 %2315 }
 0xebc   : > { %v2312_v7 = vpop.permute.xlu1 %2311 }
 0xebd   : > { %v2322_v8 = vsel %vm1242_vm7, %v2166_v0, %v2312_v7 }
 0xebe   : > { %v2323_v10 = vsel %vm1691_vm11, %v2322_v8, %v2316_v9 }
 0xef0   : > { %v2320_v11 = vpop.permute.xlu1 %2319 }
 0xef1   : > { %v2324_v12 = vsel %vm1693_vm12, %v2323_v10, %v2320_v11 }
 0xef2   : > { %v2325_v13 = vpack.c.bf16 %v2324_v12, %v2324_v12 }
 0xef4   : > { %3162 = vmatmul.mubr.msk.bf16.vlgmr.msra.gmra.mrb[44].mxu1 %vm756_vm0, %v2325_v13 }
 0xef5   : > { %3181 = vmatprep.mubr.msk.bf16.mxu1 %vm3955_vm1, %v3954_v14 }
 0xfc7   : > { %v2388_v16 = vpop.f32.mrb[44].mxu1 }
 0xfc8   : > { %v2389_v17 = vadd.f32 %v2921_v15, %v2388_v16  ;;  %v3163_v18 = vpop.f32.mrb[45].mxu1 }
 0xfc9   : > { %v2391_v19 = vpop.f32.mrb[46].mxu1 }
 0xfca   : > { %v4819_v20 = vadd.f32 %v2389_v17, %v4715_v43  ;;  %v3164_v21 = vpop.f32.mrb[47].mxu1  ;;  %v3394_v43 = vld [vmem:[#allocation24] sm:$0xff]  }
 0xfcb   : > { %3174 = vmatpush3.bf16.msra.mxu1 %v3394_v43 }
 0xfcc   : > { %v2397_v22 = vsel %vm756_vm0, %v4819_v20, 0.0  ;;  %3175 = vmatprep.subr.bf16.mxu1 %v3954_v14 }
 0xfcd   : > { %2398 = vadd.xlane.f32.xlu0 %v2397_v22 }
 0xfcf   : > { %3176 = vmatpush3.bf16.msra.mxu1 %v3395_v31 }
 0xfd0   : > { %3177 = vmatprep.subr.bf16.mxu1 %v3954_v14 }
 0xfd3   : > { %3178 = vmatpush3.bf16.msra.mxu1 %v3396_v47 }
 0xfd4   : > { %3179 = vmatprep.subr.bf16.mxu1 %v3954_v14 }
 0xfd7   : > { %3180 = vmatpush3.bf16.msra.mxu1 %v3397_v48 }
0x105a   : > { %v2399_v24 = vpop.xlane.xlu0 %2398 }
0x105b   : > { %v2400_v25 = vmul.f32 0.03125, %v2399_v24 }
0x105d   : > { %v2401_v26 = vsub.f32 %v4819_v20, %v2400_v25 }
0x105f   : > { %v2402_v27 = vmul.f32 %v2401_v26, %v2401_v26  ;;  %v2415_v23 = vmul.f32 %v2414_v40, %v2401_v26 }
0x1061   : > { %v2403_v28 = vsel %vm756_vm0, %v2402_v27, 0.0 }
0x1062   : > { %2404 = vadd.xlane.f32.xlu1 %v2403_v28 }
0x10ef   : > { %v2405_v32 = vpop.xlane.xlu1 %2404 }
0x10f0   : > { %v2406_v33 = vmul.f32 0.032258064, %v2405_v32 }
0x10f2   : > { %3442 = vrsqrt.f32 %v2406_v33  ;;  %vm2409_vm1 = vcmp.eq.f32.partialorder %v2406_v33, inf  ;;  %v2412_v36 = vand.u32 2147483648, %v2406_v33  ;;  %vm2411_vm3 = vcmp.eq.f32.partialorder %v2406_v33, 0.0 }
0x10fc   : > { %v3443_v34 = vpop.eup %3442 }
0x10fd   : > { %v2408_v35 = vmul.f32 %v3443_v34, %v2406_v33 }
0x10ff   : > { %v2410_v37 = vsel %vm2409_vm1, %v2406_v33, %v2408_v35 }
0x1100   : > { %v2413_v38 = vsel %vm2411_vm3, %v2412_v36, %v2410_v37 }
0x1101   : > { %v2416_v39 = vadd.f32 1e-06, %v2413_v38 }
0x1103   : > { %3444 = vrcp.f32 %v2416_v39 }
0x110d   : > { %v3445_v41 = vpop.eup %3444 }
0x110e   : > { %v2418_v44 = vmul.f32 %v3445_v41, %v2415_v23 }
0x1110   : > { %v2420_v45 = vadd.f32 %v2419_v42, %v2418_v44 }
0x1112   : > { %v2421_v46 = vpack.c.bf16 %v2420_v45, %v2420_v45 }
0x1114   : > { %3170 = vmatmul.mubr.msk.bf16.vlgmr.msra.gmra.mrb[48].mxu0 %vm756_vm0, %v2421_v46 }
0x11e7   : > { %v2482_v50 = vpop.f32.mrb[48].mxu0 }
0x11e8   : > { %v2483_v51 = vadd.f32 %v2927_v49, %v2482_v50  ;;  %v3171_v52 = vpop.f32.mrb[49].mxu0 }
0x11e9   : > { %v2485_v0 = vpop.f32.mrb[50].mxu0 }
0x11ea   : > { %v2488_v53 = vmax.f32 %v2483_v51, 0.0  ;;  %v3172_v54 = vpop.f32.mrb[51].mxu0 }
0x11ec   : > { %v2489_v55 = vpack.c.bf16 %v2488_v53, %v2488_v53 }
0x11ee   : > { %3182 = vmatmul.mubr.msk.bf16.vlgmr.msra.gmra.mrb[48].mxu1 %vm2529_vm4, %v2489_v55 }
0x12c1   : > { %v2567_v57 = vpop.f32.mrb[48].mxu1 }
0x12c2   : > { %v2568_v14 = vadd.f32 %v2931_v56, %v2567_v57  ;;  %v3183_v59 = vpop.f32.mrb[49].mxu1 }
0x12c3   : > { %v2570_v58 = vpop.f32.mrb[50].mxu1 }
0x12c4   : > { %v2573_v60 = vadd.f32 %v2568_v14, %v4819_v20  ;;  %v3184_v61 = vpop.f32.mrb[51].mxu1 }
0x12c6   : > { %2574 = vst.msk [vmem:[%s745_s3] sm:$0xff] %vm756_vm0, %v2573_v60 }
0x12c7   : > { %3829 = shalt.err (!%p3826_p0)
}
0x12c8   : > { %s3830_s20 = scalar_lea.hbm %s4836_s13, 128  ;;  %s3834_s9 = scalar_lea.hbm %s4999_s6, 256 }
0x12c9   : > { %p3831_p7 = scmp.ne.s32.totalorder %s4836_s13, %s3830_s20  ;;  %p3835_p12 = scmp.lt.u32.totalorder %s4836_s13, %s4999_s6 }
0x12ca   : > { %p3836_p11 = scmp.lt.u32.totalorder %s3834_s9, %s3830_s20  ;;  %p3838_p5 = scmp.lt.u32.totalorder %s3830_s20, %s4836_s13 }
0x12cb   : > { %p3832_p10 = pnand %p3831_p7, %p5000_p2 }
0x12cc   : > { %p3837_p6 = por %p3836_p11, %p3835_p12 }
0x12cd   : > { %p3833_p3 = pneg %p3832_p10 }
0x12ce   : > { %p3839_p8 = por %p3838_p5, %p3837_p6 }
0x12d0   : > { %p3840_p4 = pnand %p3839_p8, %p3833_p3 }
0x12d2   : > { %3843 = shalt.err (!%p3840_p4)
}
0x12d3   : > { %3233 = dma.vmem_to_hbm [thread:$0]  (%p5000_p2), %s4838_s25, 128, %s4836_s13, %s2576_s22  }
0x12d4 PF: > { %s5001_s26 = sld [smem:[#allocation47_spill]]  ;;  %s2602_s3 = sand.u32 1, %s3914_s29  }
0x12d5   : > { %p5003_p1 = scmp.ge.s32.totalorder %s3934_s18, 2  ;;  %s2603_s19 = scalar_lea.sflag [#allocation8], %s2602_s3 }
0x12da   : > { %p5002_p13 = scmp.ne.s32.totalorder %s5001_s26, 0 }
0x12dc   : > { %p3280_p9 = pnand %p5003_p1, %p5002_p13 }
0x12de   : > { %3909 = dma.done.wait (!%p3280_p9), %s2603_s19, 128  }
0x12df   : > { %3911 = vsyncadd (!%p3280_p9), %s2603_s19, 4294967168  ;;  %s42_s18 = sadd.s32 1, %s3934_s18   ;;  %s5004_s21 = sld [smem:[#allocation42_spill]] }
0x12e0   : > { %p39_p0 = scmp.ge.s32.totalorder %s42_s18, 4   ;;  %s5005_s15 = sld [smem:[#allocation46_spill]] }
0x12e1   : > { %s5006_s14 = sld [smem:[#allocation45_spill]]  ;;  %s5007_s29 = smov %s3918_s30 }
0x12e2   : > { %s5009_s16 = smov %s3930_s17  ;;  %41 = sbr.rel (!%p39_p0) target bundleno = 28 (0x1c), region = 216 }
0x12e5   : > { %s5008_s30 = smov %s5004_s21 }
0x12e7   : > { %s5010_s17 = smov %s5006_s14 }
0x12e9   :  { %2608 = vsyncpa [#allocation7], 1 }
0x12ea   :  { %2610 = vsyncpa [#allocation7 + $0x1], 1 }
0x12eb   :  { %2611 = vsyncpa [#allocation11], 1 }
0x12ec   :  { %2613 = vsyncpa [#allocation11 + $0x1], 1 }
0x12ed   :  { %2614 = vsyncpa [#allocation14], 1 }
0x12ee   :  { %2616 = vsyncpa [#allocation14 + $0x1], 1 }
0x12ef   :  { %2617 = vsyncpa [#allocation17], 1 }
0x12f0   :  { %2618 = vsyncpa [#allocation20], 1 }
0x12f1   :  { %2619 = vsyncpa [#allocation23], 1 }
0x12f2   :  { %2620 = vsyncpa [#allocation26], 1 }
0x12f3   :  { %2621 = vsyncpa [#allocation8], 1 }
0x12f4   :  { %2623 = vsyncpa [#allocation8 + $0x1], 1 }
0x12f5   :  { %2624 = vsyncpa [#allocation9], 1 }
0x12f6   :  { %2626 = vsyncpa [#allocation9 + $0x1], 1 }
0x12f7   :  { %2627 = vsyncpa [#allocation29], 1 }

</bundles_post_ra>
